<compile_context>
chip_gen: v7x
topology: tpu7x:2x2x1
jax: 0.10.0
libtpu: 0.0.40
codegen_flags: <defaults>
</compile_context>

<pallas_src>
import numpy as np
import jax
import jax.numpy as jnp
from jax import lax
from jax.experimental import pallas as pl
from jax.experimental.pallas import tpu as pltpu


# ---------------------------------------------------------------------------
# Fused Pallas kernel
# ---------------------------------------------------------------------------
def _make_csar_kernel(H, W):
    HW = H * W

    def kernel(x_ref, w1_ref, b1_ref, w2_ref, b2_ref,
               fc1w_ref, fc1b_ref, fc2wT_ref, fc2b_ref,
               sa1w_ref, sa1b_ref, sa2w_ref, sa2b_ref,
               cowA_ref, cowB_ref, cob_ref, o_ref):
        x = x_ref[0]                                          # (C, HW) f32, lanes = HW

        # column index of each flattened spatial position (for left/right edge masks)
        w_idx = lax.broadcasted_iota(jnp.int32, (1, HW), 1) % W
        m_left = w_idx >= 1                                   # valid when sampling col w-1
        m_right = w_idx < (W - 1)                             # valid when sampling col w+1

        def shift_hw(v, s):
            # non-circular shift along the flattened spatial (lane) axis:
            #   out[:, i] = v[:, i + s], zero-filled outside [0, HW)
            if s == 0:
                return v
            pad = jnp.zeros((v.shape[0], abs(s)), v.dtype)
            if s > 0:
                return jnp.concatenate([v[:, s:], pad], axis=1)
            return jnp.concatenate([pad, v[:, :HW + s]], axis=1)

        def conv3x3(v, w_ref, b_ref):
            # v: (Cin, HW) f32 ; w_ref: (9, Cout, Cin) bf16 ; b_ref: (Cout, 1) f32
            vb = v.astype(jnp.bfloat16)
            acc = jnp.zeros((w_ref.shape[1], HW), jnp.float32)
            t = 0
            for dh in (-1, 0, 1):
                for dw in (-1, 0, 1):
                    sv = shift_hw(vb, dh * W + dw)
                    if dw < 0:
                        sv = jnp.where(m_left, sv, jnp.zeros_like(sv))
                    elif dw > 0:
                        sv = jnp.where(m_right, sv, jnp.zeros_like(sv))
                    acc = acc + jnp.dot(w_ref[t], sv,
                                        preferred_element_type=jnp.float32)
                    t += 1
            return acc + b_ref[...]

        # ---- conv_in: 3x3 -> ReLU -> 3x3 --------------------------------------
        t1 = jnp.maximum(conv3x3(x, w1_ref, b1_ref), 0.0)     # (C, HW)
        x_in = conv3x3(t1, w2_ref, b2_ref)                    # (C, HW)

        # ---- channel attention: GAP -> FC -> ReLU -> FC -> sigmoid ------------
        # (tiny: done with broadcast-multiply + reduce, off the MXU path)
        gap = jnp.mean(x_in, axis=1, keepdims=True)           # (C, 1)
        z = jnp.maximum(
            jnp.sum(fc1w_ref[...] * gap, axis=0, keepdims=True) + fc1b_ref[...],
            0.0)                                              # (1, C//4)
        att_c = jax.nn.sigmoid(
            jnp.sum(fc2wT_ref[...] * z, axis=1, keepdims=True) + fc2b_ref[...])  # (C, 1)
        # ChannelAttention returns x_in * att ; CSAR multiplies by x_in again
        ca = x_in * (x_in * att_c)                            # (C, HW)

        # ---- spatial attention: 1x1 -> ReLU -> 1x1 -> sigmoid ------------------
        x_in_b = x_in.astype(jnp.bfloat16)
        s = jnp.maximum(
            jnp.dot(sa1w_ref[...], x_in_b, preferred_element_type=jnp.float32)
            + sa1b_ref[...], 0.0)                             # (2C, HW)
        att_s = jax.nn.sigmoid(
            jnp.dot(sa2w_ref[...], s.astype(jnp.bfloat16),
                    preferred_element_type=jnp.float32) + sa2b_ref[...])          # (C, HW)
        sa = x_in * att_s                                     # (C, HW)

        # ---- conv_out on the implicit concat (two accumulated matmuls) + residual
        out = (jnp.dot(cowA_ref[...], ca.astype(jnp.bfloat16),
                       preferred_element_type=jnp.float32)
               + jnp.dot(cowB_ref[...], sa.astype(jnp.bfloat16),
                         preferred_element_type=jnp.float32)
               + cob_ref[...])
        o_ref[0] = x + out

    return kernel


# ---------------------------------------------------------------------------
# Wrapper
# ---------------------------------------------------------------------------
def csar_pallas(x_nchw, params):
    (w1, b1, w2, b2, fc1w, fc1b, fc2w, fc2b,
     sa1w, sa1b, sa2w, sa2b, cow, cob) = params

    x = x_nchw.astype(jnp.float32)
    N, C, H, W = x.shape
    HW = H * W
    Cq = fc1w.shape[1]

    # NCHW is already channels-major -> the (C, HW) compute layout is a pure reshape.
    x_t = x.reshape(N, C, HW)

    bf = jnp.bfloat16
    f32 = jnp.float32
    # 3x3 conv weights (HWIO) -> per-tap transposed (9, Cout, Cin), bf16 for the MXU.
    w1_t = jnp.transpose(w1, (0, 1, 3, 2)).reshape(9, C, C).astype(bf)
    w2_t = jnp.transpose(w2, (0, 1, 3, 2)).reshape(9, C, C).astype(bf)
    sa1w_t = sa1w.T.astype(bf)                   # (2C, C)
    sa2w_t = sa2w.T.astype(bf)                   # (C, 2C)
    cowA_t = cow[:C].T.astype(bf)                # (C, C)  -> channel-attention half
    cowB_t = cow[C:].T.astype(bf)                # (C, C)  -> spatial-attention half

    b1c = b1.reshape(C, 1).astype(f32)
    b2c = b2.reshape(C, 1).astype(f32)
    fc1w_f = fc1w.astype(f32)                    # (C, Cq)
    fc1b_r = fc1b.reshape(1, Cq).astype(f32)
    fc2wT = fc2w.T.astype(f32)                   # (C, Cq)
    fc2b_c = fc2b.reshape(C, 1).astype(f32)
    sa1b_c = sa1b.reshape(2 * C, 1).astype(f32)
    sa2b_c = sa2b.reshape(C, 1).astype(f32)
    cob_c = cob.reshape(C, 1).astype(f32)

    weights = (w1_t, b1c, w2_t, b2c, fc1w_f, fc1b_r, fc2wT, fc2b_c,
               sa1w_t, sa1b_c, sa2w_t, sa2b_c, cowA_t, cowB_t, cob_c)

    def rep(a):
        nd = a.ndim
        return pl.BlockSpec(a.shape, lambda n, _nd=nd: (0,) * _nd)

    kernel = _make_csar_kernel(H, W)

    out_t = pl.pallas_call(
        kernel,
        out_shape=jax.ShapeDtypeStruct((N, C, HW), jnp.float32),
        grid=(N,),
        in_specs=[pl.BlockSpec((1, C, HW), lambda n: (n, 0, 0))]
                 + [rep(a) for a in weights],
        out_specs=pl.BlockSpec((1, C, HW), lambda n: (n, 0, 0)),
        compiler_params=pltpu.CompilerParams(dimension_semantics=("parallel",)),
    )(x_t, *weights)

    return out_t.reshape(N, C, H, W)              # already NCHW


csar_pallas_jit = jax.jit(csar_pallas)


# ---------------------------------------------------------------------------
# Pure-JAX reference (for correctness check)
# ---------------------------------------------------------------------------
def csar_ref(x_nchw, params):
    (w1, b1, w2, b2, fc1w, fc1b, fc2w, fc2b,
     sa1w, sa1b, sa2w, sa2b, cow, cob) = params
    x = jnp.transpose(x_nchw, (0, 2, 3, 1)).astype(jnp.float32)

    def conv3(a, w, b):
        return lax.conv_general_dilated(
            a, w, (1, 1), 'SAME',
            dimension_numbers=('NHWC', 'HWIO', 'NHWC')) + b

    def conv1x1(a, w, b):
        return jnp.einsum('nhwc,cd->nhwd', a, w) + b

    t1 = jax.nn.relu(conv3(x, w1, b1))
    x_in = conv3(t1, w2, b2)
    gap = jnp.mean(x_in, axis=(1, 2))
    z = jax.nn.relu(gap @ fc1w + fc1b)
    att_c = jax.nn.sigmoid(z @ fc2w + fc2b)
    x_ca = x_in * att_c[:, None, None, :]
    s = jax.nn.relu(conv1x1(x_in, sa1w, sa1b))
    x_sa = jax.nn.sigmoid(conv1x1(s, sa2w, sa2b))
    cat = jnp.concatenate([x_in * x_ca, x_in * x_sa], axis=-1)
    y = x + conv1x1(cat, cow, cob)
    return jnp.transpose(y, (0, 3, 1, 2))


# ---------------------------------------------------------------------------
# Deterministic parameter init (synthetic, matches module shapes)
# ---------------------------------------------------------------------------
def init_params(key, C):
    Cq = max(C // 4, 1)
    ks = jax.random.split(key, 14)
    f = lambda k, shape, s: jax.random.normal(k, shape, jnp.float32) * s
    w1 = f(ks[0], (3, 3, C, C), 0.10); b1 = f(ks[1], (C,), 0.05)
    w2 = f(ks[2], (3, 3, C, C), 0.10); b2 = f(ks[3], (C,), 0.05)
    fc1w = f(ks[4], (C, Cq), 0.20);    fc1b = f(ks[5], (Cq,), 0.05)
    fc2w = f(ks[6], (Cq, C), 0.20);    fc2b = f(ks[7], (C,), 0.05)
    sa1w = f(ks[8], (C, 2 * C), 0.15); sa1b = f(ks[9], (2 * C,), 0.05)
    sa2w = f(ks[10], (2 * C, C), 0.15); sa2b = f(ks[11], (C,), 0.05)
    cow = f(ks[12], (2 * C, C), 0.15); cob = f(ks[13], (C,), 0.05)
    return (w1, b1, w2, b2, fc1w, fc1b, fc2w, fc2b,
            sa1w, sa1b, sa2w, sa2b, cow, cob)


if __name__ == "__main__":
    key = jax.random.PRNGKey(0)
    kx, kp = jax.random.split(key)

    N, C, H, W = 2, 8, 16, 16            # PyTorch NCHW input shape
    x = jax.random.normal(kx, (N, C, H, W), jnp.float32)
    params = init_params(kp, C)

    y = jax.block_until_ready(csar_pallas_jit(x, params))
    y_ref = jax.block_until_ready(csar_ref(x, params))

    assert y.shape == (N, C, H, W)
    np.testing.assert_allclose(np.asarray(y), np.asarray(y_ref), rtol=2e-2, atol=2e-2)
    print("KERNEL_OK")
</pallas_src>

<mosaic_0001>
module attributes {stable_mosaic.version = 11 : i64} {
  func.func @kernel(%arg0: i32, %arg1: memref<1x8x256xf32, #tpu.memory_space<vmem>>, %arg2: memref<9x8x8xbf16, #tpu.memory_space<vmem>>, %arg3: memref<8x1xf32, #tpu.memory_space<vmem>>, %arg4: memref<9x8x8xbf16, #tpu.memory_space<vmem>>, %arg5: memref<8x1xf32, #tpu.memory_space<vmem>>, %arg6: memref<8x2xf32, #tpu.memory_space<vmem>>, %arg7: memref<1x2xf32, #tpu.memory_space<vmem>>, %arg8: memref<8x2xf32, #tpu.memory_space<vmem>>, %arg9: memref<8x1xf32, #tpu.memory_space<vmem>>, %arg10: memref<16x8xbf16, #tpu.memory_space<vmem>>, %arg11: memref<16x1xf32, #tpu.memory_space<vmem>>, %arg12: memref<8x16xbf16, #tpu.memory_space<vmem>>, %arg13: memref<8x1xf32, #tpu.memory_space<vmem>>, %arg14: memref<8x8xbf16, #tpu.memory_space<vmem>>, %arg15: memref<8x8xbf16, #tpu.memory_space<vmem>>, %arg16: memref<8x1xf32, #tpu.memory_space<vmem>>, %arg17: memref<1x8x256xf32, #tpu.memory_space<vmem>>) attributes {dimension_semantics = [#tpu.dimension_semantics<parallel>], iteration_bounds = array<i64: 2>, scalar_prefetch = 0 : i64, scratch_operands = 0 : i64, tpu.core_type = #tpu.core_type<tc>, window_params = [{transform_indices = @transform_0, window_bounds = array<i64: 1, 8, 256>}, {pipeline_mode = #tpu.pipeline_mode<synchronous>, transform_indices = @transform_1, window_bounds = array<i64: 9, 8, 8>}, {pipeline_mode = #tpu.pipeline_mode<synchronous>, transform_indices = @transform_2, window_bounds = array<i64: 8, 1>}, {pipeline_mode = #tpu.pipeline_mode<synchronous>, transform_indices = @transform_3, window_bounds = array<i64: 9, 8, 8>}, {pipeline_mode = #tpu.pipeline_mode<synchronous>, transform_indices = @transform_4, window_bounds = array<i64: 8, 1>}, {pipeline_mode = #tpu.pipeline_mode<synchronous>, transform_indices = @transform_5, window_bounds = array<i64: 8, 2>}, {pipeline_mode = #tpu.pipeline_mode<synchronous>, transform_indices = @transform_6, window_bounds = array<i64: 1, 2>}, {pipeline_mode = #tpu.pipeline_mode<synchronous>, transform_indices = @transform_7, window_bounds = array<i64: 8, 2>}, {pipeline_mode = #tpu.pipeline_mode<synchronous>, transform_indices = @transform_8, window_bounds = array<i64: 8, 1>}, {pipeline_mode = #tpu.pipeline_mode<synchronous>, transform_indices = @transform_9, window_bounds = array<i64: 16, 8>}, {pipeline_mode = #tpu.pipeline_mode<synchronous>, transform_indices = @transform_10, window_bounds = array<i64: 16, 1>}, {pipeline_mode = #tpu.pipeline_mode<synchronous>, transform_indices = @transform_11, window_bounds = array<i64: 8, 16>}, {pipeline_mode = #tpu.pipeline_mode<synchronous>, transform_indices = @transform_12, window_bounds = array<i64: 8, 1>}, {pipeline_mode = #tpu.pipeline_mode<synchronous>, transform_indices = @transform_13, window_bounds = array<i64: 8, 8>}, {pipeline_mode = #tpu.pipeline_mode<synchronous>, transform_indices = @transform_14, window_bounds = array<i64: 8, 8>}, {pipeline_mode = #tpu.pipeline_mode<synchronous>, transform_indices = @transform_15, window_bounds = array<i64: 8, 1>}, {transform_indices = @transform_16, window_bounds = array<i64: 1, 8, 256>}]} {
    %c0 = arith.constant 0 : index
    %c0_0 = arith.constant 0 : index
    %c0_1 = arith.constant 0 : index
    %0 = vector.load %arg1[%c0, %c0_0, %c0_1] : memref<1x8x256xf32, #tpu.memory_space<vmem>>, vector<1x8x256xf32>
    %1 = vector.shape_cast %0 : vector<1x8x256xf32> to vector<8x256xf32>
    %2 = tpu.iota {dimensions = array<i32: 1>} : vector<1x256xi32>
    %c16_i32 = arith.constant 16 : i32
    %c0_i32 = arith.constant 0 : i32
    %3 = arith.cmpi eq, %c16_i32, %c0_i32 : i32
    %c1_i32 = arith.constant 1 : i32
    %4 = arith.select %3, %c1_i32, %c16_i32 : i32
    %5 = vector.broadcast %4 : i32 to vector<1x256xi32>
    %6 = arith.remsi %2, %5 : vector<1x256xi32>
    %c0_i32_2 = arith.constant 0 : i32
    %7 = vector.broadcast %c0_i32_2 : i32 to vector<1x256xi32>
    %8 = arith.cmpi ne, %6, %7 : vector<1x256xi32>
    %c0_i32_3 = arith.constant 0 : i32
    %9 = vector.broadcast %c0_i32_3 : i32 to vector<1x256xi32>
    %10 = arith.cmpi slt, %6, %9 : vector<1x256xi32>
    %c0_i32_4 = arith.constant 0 : i32
    %11 = arith.cmpi slt, %4, %c0_i32_4 : i32
    %12 = vector.broadcast %11 : i1 to vector<1x256xi1>
    %13 = vector.broadcast %12 : vector<1x256xi1> to vector<1x256xi1>
    %14 = arith.xori %10, %13 : vector<1x256xi1>
    %15 = arith.andi %14, %8 : vector<1x256xi1>
    %16 = vector.broadcast %4 : i32 to vector<1x256xi32>
    %17 = arith.addi %6, %16 : vector<1x256xi32>
    %18 = arith.select %15, %17, %6 : vector<1x256xi1>, vector<1x256xi32>
    %c1_i32_5 = arith.constant 1 : i32
    %19 = vector.broadcast %c1_i32_5 : i32 to vector<1x256xi32>
    %20 = arith.cmpi sge, %18, %19 : vector<1x256xi32>
    %c15_i32 = arith.constant 15 : i32
    %21 = vector.broadcast %c15_i32 : i32 to vector<1x256xi32>
    %22 = arith.cmpi slt, %18, %21 : vector<1x256xi32>
    %23 = arith.truncf %1 : vector<8x256xf32> to vector<8x256xbf16>
    %cst = arith.constant 0.000000e+00 : f32
    %24 = vector.broadcast %cst : f32 to vector<8x256xf32>
    %cst_6 = arith.constant 0.000000e+00 : bf16
    %25 = vector.broadcast %cst_6 : bf16 to vector<8x17xbf16>
    %26 = vector.extract_strided_slice %23 {offsets = [0, 0], sizes = [8, 239], strides = [1, 1]} : vector<8x256xbf16> to vector<8x239xbf16>
    %27 = tpu.concatenate %25, %26 in 1 : vector<8x17xbf16>, vector<8x239xbf16> -> vector<8x256xbf16>
    %cst_7 = arith.constant 0.000000e+00 : bf16
    %28 = vector.broadcast %cst_7 : bf16 to vector<8x256xbf16>
    %29 = vector.shape_cast %20 : vector<1x256xi1> to vector<1x256xi1>
    %30 = vector.broadcast %29 : vector<1x256xi1> to vector<8x256xi1>
    %31 = arith.select %30, %27, %28 : vector<8x256xi1>, vector<8x256xbf16>
    %c0_8 = arith.constant 0 : index
    %c0_9 = arith.constant 0 : index
    %c0_10 = arith.constant 0 : index
    %32 = vector.load %arg2[%c0_8, %c0_9, %c0_10] : memref<9x8x8xbf16, #tpu.memory_space<vmem>>, vector<1x8x8xbf16>
    %33 = vector.shape_cast %32 : vector<1x8x8xbf16> to vector<8x8xbf16>
    %cst_11 = arith.constant dense<0.000000e+00> : vector<8x256xf32>
    %34 = tpu.matmul %33, %31, %cst_11 {dimension_numbers = #tpu.dot_dimension_numbers<[1], [0], [0], [1], [0, 0, 1, 1], [], []>} : vector<8x8xbf16>, vector<8x256xbf16>, vector<8x256xf32> -> vector<8x256xf32>
    %35 = arith.addf %24, %34 : vector<8x256xf32>
    %cst_12 = arith.constant 0.000000e+00 : bf16
    %36 = vector.broadcast %cst_12 : bf16 to vector<8x16xbf16>
    %37 = vector.extract_strided_slice %23 {offsets = [0, 0], sizes = [8, 240], strides = [1, 1]} : vector<8x256xbf16> to vector<8x240xbf16>
    %38 = tpu.concatenate %36, %37 in 1 : vector<8x16xbf16>, vector<8x240xbf16> -> vector<8x256xbf16>
    %c1 = arith.constant 1 : index
    %c0_13 = arith.constant 0 : index
    %c0_14 = arith.constant 0 : index
    %39 = vector.load %arg2[%c1, %c0_13, %c0_14] : memref<9x8x8xbf16, #tpu.memory_space<vmem>>, vector<1x8x8xbf16>
    %40 = vector.shape_cast %39 : vector<1x8x8xbf16> to vector<8x8xbf16>
    %cst_15 = arith.constant dense<0.000000e+00> : vector<8x256xf32>
    %41 = tpu.matmul %40, %38, %cst_15 {dimension_numbers = #tpu.dot_dimension_numbers<[1], [0], [0], [1], [0, 0, 1, 1], [], []>} : vector<8x8xbf16>, vector<8x256xbf16>, vector<8x256xf32> -> vector<8x256xf32>
    %42 = arith.addf %35, %41 : vector<8x256xf32>
    %cst_16 = arith.constant 0.000000e+00 : bf16
    %43 = vector.broadcast %cst_16 : bf16 to vector<8x15xbf16>
    %44 = vector.extract_strided_slice %23 {offsets = [0, 0], sizes = [8, 241], strides = [1, 1]} : vector<8x256xbf16> to vector<8x241xbf16>
    %45 = tpu.concatenate %43, %44 in 1 : vector<8x15xbf16>, vector<8x241xbf16> -> vector<8x256xbf16>
    %cst_17 = arith.constant 0.000000e+00 : bf16
    %46 = vector.broadcast %cst_17 : bf16 to vector<8x256xbf16>
    %47 = vector.shape_cast %22 : vector<1x256xi1> to vector<1x256xi1>
    %48 = vector.broadcast %47 : vector<1x256xi1> to vector<8x256xi1>
    %49 = arith.select %48, %45, %46 : vector<8x256xi1>, vector<8x256xbf16>
    %c2 = arith.constant 2 : index
    %c0_18 = arith.constant 0 : index
    %c0_19 = arith.constant 0 : index
    %50 = vector.load %arg2[%c2, %c0_18, %c0_19] : memref<9x8x8xbf16, #tpu.memory_space<vmem>>, vector<1x8x8xbf16>
    %51 = vector.shape_cast %50 : vector<1x8x8xbf16> to vector<8x8xbf16>
    %cst_20 = arith.constant dense<0.000000e+00> : vector<8x256xf32>
    %52 = tpu.matmul %51, %49, %cst_20 {dimension_numbers = #tpu.dot_dimension_numbers<[1], [0], [0], [1], [0, 0, 1, 1], [], []>} : vector<8x8xbf16>, vector<8x256xbf16>, vector<8x256xf32> -> vector<8x256xf32>
    %53 = arith.addf %42, %52 : vector<8x256xf32>
    %cst_21 = arith.constant 0.000000e+00 : bf16
    %54 = vector.broadcast %cst_21 : bf16 to vector<8x1xbf16>
    %55 = vector.extract_strided_slice %23 {offsets = [0, 0], sizes = [8, 255], strides = [1, 1]} : vector<8x256xbf16> to vector<8x255xbf16>
    %56 = tpu.concatenate %54, %55 in 1 : vector<8x1xbf16>, vector<8x255xbf16> -> vector<8x256xbf16>
    %cst_22 = arith.constant 0.000000e+00 : bf16
    %57 = vector.broadcast %cst_22 : bf16 to vector<8x256xbf16>
    %58 = vector.shape_cast %20 : vector<1x256xi1> to vector<1x256xi1>
    %59 = vector.broadcast %58 : vector<1x256xi1> to vector<8x256xi1>
    %60 = arith.select %59, %56, %57 : vector<8x256xi1>, vector<8x256xbf16>
    %c3 = arith.constant 3 : index
    %c0_23 = arith.constant 0 : index
    %c0_24 = arith.constant 0 : index
    %61 = vector.load %arg2[%c3, %c0_23, %c0_24] : memref<9x8x8xbf16, #tpu.memory_space<vmem>>, vector<1x8x8xbf16>
    %62 = vector.shape_cast %61 : vector<1x8x8xbf16> to vector<8x8xbf16>
    %cst_25 = arith.constant dense<0.000000e+00> : vector<8x256xf32>
    %63 = tpu.matmul %62, %60, %cst_25 {dimension_numbers = #tpu.dot_dimension_numbers<[1], [0], [0], [1], [0, 0, 1, 1], [], []>} : vector<8x8xbf16>, vector<8x256xbf16>, vector<8x256xf32> -> vector<8x256xf32>
    %64 = arith.addf %53, %63 : vector<8x256xf32>
    %c4 = arith.constant 4 : index
    %c0_26 = arith.constant 0 : index
    %c0_27 = arith.constant 0 : index
    %65 = vector.load %arg2[%c4, %c0_26, %c0_27] : memref<9x8x8xbf16, #tpu.memory_space<vmem>>, vector<1x8x8xbf16>
    %66 = vector.shape_cast %65 : vector<1x8x8xbf16> to vector<8x8xbf16>
    %cst_28 = arith.constant dense<0.000000e+00> : vector<8x256xf32>
    %67 = tpu.matmul %66, %23, %cst_28 {dimension_numbers = #tpu.dot_dimension_numbers<[1], [0], [0], [1], [0, 0, 1, 1], [], []>} : vector<8x8xbf16>, vector<8x256xbf16>, vector<8x256xf32> -> vector<8x256xf32>
    %68 = arith.addf %64, %67 : vector<8x256xf32>
    %cst_29 = arith.constant 0.000000e+00 : bf16
    %69 = vector.broadcast %cst_29 : bf16 to vector<8x1xbf16>
    %70 = vector.extract_strided_slice %23 {offsets = [0, 1], sizes = [8, 255], strides = [1, 1]} : vector<8x256xbf16> to vector<8x255xbf16>
    %71 = tpu.concatenate %70, %69 in 1 : vector<8x255xbf16>, vector<8x1xbf16> -> vector<8x256xbf16>
    %cst_30 = arith.constant 0.000000e+00 : bf16
    %72 = vector.broadcast %cst_30 : bf16 to vector<8x256xbf16>
    %73 = vector.shape_cast %22 : vector<1x256xi1> to vector<1x256xi1>
    %74 = vector.broadcast %73 : vector<1x256xi1> to vector<8x256xi1>
    %75 = arith.select %74, %71, %72 : vector<8x256xi1>, vector<8x256xbf16>
    %c5 = arith.constant 5 : index
    %c0_31 = arith.constant 0 : index
    %c0_32 = arith.constant 0 : index
    %76 = vector.load %arg2[%c5, %c0_31, %c0_32] : memref<9x8x8xbf16, #tpu.memory_space<vmem>>, vector<1x8x8xbf16>
    %77 = vector.shape_cast %76 : vector<1x8x8xbf16> to vector<8x8xbf16>
    %cst_33 = arith.constant dense<0.000000e+00> : vector<8x256xf32>
    %78 = tpu.matmul %77, %75, %cst_33 {dimension_numbers = #tpu.dot_dimension_numbers<[1], [0], [0], [1], [0, 0, 1, 1], [], []>} : vector<8x8xbf16>, vector<8x256xbf16>, vector<8x256xf32> -> vector<8x256xf32>
    %79 = arith.addf %68, %78 : vector<8x256xf32>
    %cst_34 = arith.constant 0.000000e+00 : bf16
    %80 = vector.broadcast %cst_34 : bf16 to vector<8x15xbf16>
    %81 = vector.extract_strided_slice %23 {offsets = [0, 15], sizes = [8, 241], strides = [1, 1]} : vector<8x256xbf16> to vector<8x241xbf16>
    %82 = tpu.concatenate %81, %80 in 1 : vector<8x241xbf16>, vector<8x15xbf16> -> vector<8x256xbf16>
    %cst_35 = arith.constant 0.000000e+00 : bf16
    %83 = vector.broadcast %cst_35 : bf16 to vector<8x256xbf16>
    %84 = vector.shape_cast %20 : vector<1x256xi1> to vector<1x256xi1>
    %85 = vector.broadcast %84 : vector<1x256xi1> to vector<8x256xi1>
    %86 = arith.select %85, %82, %83 : vector<8x256xi1>, vector<8x256xbf16>
    %c6 = arith.constant 6 : index
    %c0_36 = arith.constant 0 : index
    %c0_37 = arith.constant 0 : index
    %87 = vector.load %arg2[%c6, %c0_36, %c0_37] : memref<9x8x8xbf16, #tpu.memory_space<vmem>>, vector<1x8x8xbf16>
    %88 = vector.shape_cast %87 : vector<1x8x8xbf16> to vector<8x8xbf16>
    %cst_38 = arith.constant dense<0.000000e+00> : vector<8x256xf32>
    %89 = tpu.matmul %88, %86, %cst_38 {dimension_numbers = #tpu.dot_dimension_numbers<[1], [0], [0], [1], [0, 0, 1, 1], [], []>} : vector<8x8xbf16>, vector<8x256xbf16>, vector<8x256xf32> -> vector<8x256xf32>
    %90 = arith.addf %79, %89 : vector<8x256xf32>
    %cst_39 = arith.constant 0.000000e+00 : bf16
    %91 = vector.broadcast %cst_39 : bf16 to vector<8x16xbf16>
    %92 = vector.extract_strided_slice %23 {offsets = [0, 16], sizes = [8, 240], strides = [1, 1]} : vector<8x256xbf16> to vector<8x240xbf16>
    %93 = tpu.concatenate %92, %91 in 1 : vector<8x240xbf16>, vector<8x16xbf16> -> vector<8x256xbf16>
    %c7 = arith.constant 7 : index
    %c0_40 = arith.constant 0 : index
    %c0_41 = arith.constant 0 : index
    %94 = vector.load %arg2[%c7, %c0_40, %c0_41] : memref<9x8x8xbf16, #tpu.memory_space<vmem>>, vector<1x8x8xbf16>
    %95 = vector.shape_cast %94 : vector<1x8x8xbf16> to vector<8x8xbf16>
    %cst_42 = arith.constant dense<0.000000e+00> : vector<8x256xf32>
    %96 = tpu.matmul %95, %93, %cst_42 {dimension_numbers = #tpu.dot_dimension_numbers<[1], [0], [0], [1], [0, 0, 1, 1], [], []>} : vector<8x8xbf16>, vector<8x256xbf16>, vector<8x256xf32> -> vector<8x256xf32>
    %97 = arith.addf %90, %96 : vector<8x256xf32>
    %cst_43 = arith.constant 0.000000e+00 : bf16
    %98 = vector.broadcast %cst_43 : bf16 to vector<8x17xbf16>
    %99 = vector.extract_strided_slice %23 {offsets = [0, 17], sizes = [8, 239], strides = [1, 1]} : vector<8x256xbf16> to vector<8x239xbf16>
    %100 = tpu.concatenate %99, %98 in 1 : vector<8x239xbf16>, vector<8x17xbf16> -> vector<8x256xbf16>
    %cst_44 = arith.constant 0.000000e+00 : bf16
    %101 = vector.broadcast %cst_44 : bf16 to vector<8x256xbf16>
    %102 = vector.shape_cast %22 : vector<1x256xi1> to vector<1x256xi1>
    %103 = vector.broadcast %102 : vector<1x256xi1> to vector<8x256xi1>
    %104 = arith.select %103, %100, %101 : vector<8x256xi1>, vector<8x256xbf16>
    %c8 = arith.constant 8 : index
    %c0_45 = arith.constant 0 : index
    %c0_46 = arith.constant 0 : index
    %105 = vector.load %arg2[%c8, %c0_45, %c0_46] : memref<9x8x8xbf16, #tpu.memory_space<vmem>>, vector<1x8x8xbf16>
    %106 = vector.shape_cast %105 : vector<1x8x8xbf16> to vector<8x8xbf16>
    %cst_47 = arith.constant dense<0.000000e+00> : vector<8x256xf32>
    %107 = tpu.matmul %106, %104, %cst_47 {dimension_numbers = #tpu.dot_dimension_numbers<[1], [0], [0], [1], [0, 0, 1, 1], [], []>} : vector<8x8xbf16>, vector<8x256xbf16>, vector<8x256xf32> -> vector<8x256xf32>
    %108 = arith.addf %97, %107 : vector<8x256xf32>
    %c0_48 = arith.constant 0 : index
    %c0_49 = arith.constant 0 : index
    %109 = vector.load %arg3[%c0_48, %c0_49] : memref<8x1xf32, #tpu.memory_space<vmem>>, vector<8x1xf32>
    %110 = vector.broadcast %109 : vector<8x1xf32> to vector<8x256xf32>
    %111 = arith.addf %108, %110 : vector<8x256xf32>
    %cst_50 = arith.constant 0.000000e+00 : f32
    %112 = vector.broadcast %cst_50 : f32 to vector<8x256xf32>
    %113 = arith.maximumf %111, %112 : vector<8x256xf32>
    %114 = arith.truncf %113 : vector<8x256xf32> to vector<8x256xbf16>
    %cst_51 = arith.constant 0.000000e+00 : f32
    %115 = vector.broadcast %cst_51 : f32 to vector<8x256xf32>
    %cst_52 = arith.constant 0.000000e+00 : bf16
    %116 = vector.broadcast %cst_52 : bf16 to vector<8x17xbf16>
    %117 = vector.extract_strided_slice %114 {offsets = [0, 0], sizes = [8, 239], strides = [1, 1]} : vector<8x256xbf16> to vector<8x239xbf16>
    %118 = tpu.concatenate %116, %117 in 1 : vector<8x17xbf16>, vector<8x239xbf16> -> vector<8x256xbf16>
    %cst_53 = arith.constant 0.000000e+00 : bf16
    %119 = vector.broadcast %cst_53 : bf16 to vector<8x256xbf16>
    %120 = vector.shape_cast %20 : vector<1x256xi1> to vector<1x256xi1>
    %121 = vector.broadcast %120 : vector<1x256xi1> to vector<8x256xi1>
    %122 = arith.select %121, %118, %119 : vector<8x256xi1>, vector<8x256xbf16>
    %c0_54 = arith.constant 0 : index
    %c0_55 = arith.constant 0 : index
    %c0_56 = arith.constant 0 : index
    %123 = vector.load %arg4[%c0_54, %c0_55, %c0_56] : memref<9x8x8xbf16, #tpu.memory_space<vmem>>, vector<1x8x8xbf16>
    %124 = vector.shape_cast %123 : vector<1x8x8xbf16> to vector<8x8xbf16>
    %cst_57 = arith.constant dense<0.000000e+00> : vector<8x256xf32>
    %125 = tpu.matmul %124, %122, %cst_57 {dimension_numbers = #tpu.dot_dimension_numbers<[1], [0], [0], [1], [0, 0, 1, 1], [], []>} : vector<8x8xbf16>, vector<8x256xbf16>, vector<8x256xf32> -> vector<8x256xf32>
    %126 = arith.addf %115, %125 : vector<8x256xf32>
    %cst_58 = arith.constant 0.000000e+00 : bf16
    %127 = vector.broadcast %cst_58 : bf16 to vector<8x16xbf16>
    %128 = vector.extract_strided_slice %114 {offsets = [0, 0], sizes = [8, 240], strides = [1, 1]} : vector<8x256xbf16> to vector<8x240xbf16>
    %129 = tpu.concatenate %127, %128 in 1 : vector<8x16xbf16>, vector<8x240xbf16> -> vector<8x256xbf16>
    %c1_59 = arith.constant 1 : index
    %c0_60 = arith.constant 0 : index
    %c0_61 = arith.constant 0 : index
    %130 = vector.load %arg4[%c1_59, %c0_60, %c0_61] : memref<9x8x8xbf16, #tpu.memory_space<vmem>>, vector<1x8x8xbf16>
    %131 = vector.shape_cast %130 : vector<1x8x8xbf16> to vector<8x8xbf16>
    %cst_62 = arith.constant dense<0.000000e+00> : vector<8x256xf32>
    %132 = tpu.matmul %131, %129, %cst_62 {dimension_numbers = #tpu.dot_dimension_numbers<[1], [0], [0], [1], [0, 0, 1, 1], [], []>} : vector<8x8xbf16>, vector<8x256xbf16>, vector<8x256xf32> -> vector<8x256xf32>
    %133 = arith.addf %126, %132 : vector<8x256xf32>
    %cst_63 = arith.constant 0.000000e+00 : bf16
    %134 = vector.broadcast %cst_63 : bf16 to vector<8x15xbf16>
    %135 = vector.extract_strided_slice %114 {offsets = [0, 0], sizes = [8, 241], strides = [1, 1]} : vector<8x256xbf16> to vector<8x241xbf16>
    %136 = tpu.concatenate %134, %135 in 1 : vector<8x15xbf16>, vector<8x241xbf16> -> vector<8x256xbf16>
    %cst_64 = arith.constant 0.000000e+00 : bf16
    %137 = vector.broadcast %cst_64 : bf16 to vector<8x256xbf16>
    %138 = vector.shape_cast %22 : vector<1x256xi1> to vector<1x256xi1>
    %139 = vector.broadcast %138 : vector<1x256xi1> to vector<8x256xi1>
    %140 = arith.select %139, %136, %137 : vector<8x256xi1>, vector<8x256xbf16>
    %c2_65 = arith.constant 2 : index
    %c0_66 = arith.constant 0 : index
    %c0_67 = arith.constant 0 : index
    %141 = vector.load %arg4[%c2_65, %c0_66, %c0_67] : memref<9x8x8xbf16, #tpu.memory_space<vmem>>, vector<1x8x8xbf16>
    %142 = vector.shape_cast %141 : vector<1x8x8xbf16> to vector<8x8xbf16>
    %cst_68 = arith.constant dense<0.000000e+00> : vector<8x256xf32>
    %143 = tpu.matmul %142, %140, %cst_68 {dimension_numbers = #tpu.dot_dimension_numbers<[1], [0], [0], [1], [0, 0, 1, 1], [], []>} : vector<8x8xbf16>, vector<8x256xbf16>, vector<8x256xf32> -> vector<8x256xf32>
    %144 = arith.addf %133, %143 : vector<8x256xf32>
    %cst_69 = arith.constant 0.000000e+00 : bf16
    %145 = vector.broadcast %cst_69 : bf16 to vector<8x1xbf16>
    %146 = vector.extract_strided_slice %114 {offsets = [0, 0], sizes = [8, 255], strides = [1, 1]} : vector<8x256xbf16> to vector<8x255xbf16>
    %147 = tpu.concatenate %145, %146 in 1 : vector<8x1xbf16>, vector<8x255xbf16> -> vector<8x256xbf16>
    %cst_70 = arith.constant 0.000000e+00 : bf16
    %148 = vector.broadcast %cst_70 : bf16 to vector<8x256xbf16>
    %149 = vector.shape_cast %20 : vector<1x256xi1> to vector<1x256xi1>
    %150 = vector.broadcast %149 : vector<1x256xi1> to vector<8x256xi1>
    %151 = arith.select %150, %147, %148 : vector<8x256xi1>, vector<8x256xbf16>
    %c3_71 = arith.constant 3 : index
    %c0_72 = arith.constant 0 : index
    %c0_73 = arith.constant 0 : index
    %152 = vector.load %arg4[%c3_71, %c0_72, %c0_73] : memref<9x8x8xbf16, #tpu.memory_space<vmem>>, vector<1x8x8xbf16>
    %153 = vector.shape_cast %152 : vector<1x8x8xbf16> to vector<8x8xbf16>
    %cst_74 = arith.constant dense<0.000000e+00> : vector<8x256xf32>
    %154 = tpu.matmul %153, %151, %cst_74 {dimension_numbers = #tpu.dot_dimension_numbers<[1], [0], [0], [1], [0, 0, 1, 1], [], []>} : vector<8x8xbf16>, vector<8x256xbf16>, vector<8x256xf32> -> vector<8x256xf32>
    %155 = arith.addf %144, %154 : vector<8x256xf32>
    %c4_75 = arith.constant 4 : index
    %c0_76 = arith.constant 0 : index
    %c0_77 = arith.constant 0 : index
    %156 = vector.load %arg4[%c4_75, %c0_76, %c0_77] : memref<9x8x8xbf16, #tpu.memory_space<vmem>>, vector<1x8x8xbf16>
    %157 = vector.shape_cast %156 : vector<1x8x8xbf16> to vector<8x8xbf16>
    %cst_78 = arith.constant dense<0.000000e+00> : vector<8x256xf32>
    %158 = tpu.matmul %157, %114, %cst_78 {dimension_numbers = #tpu.dot_dimension_numbers<[1], [0], [0], [1], [0, 0, 1, 1], [], []>} : vector<8x8xbf16>, vector<8x256xbf16>, vector<8x256xf32> -> vector<8x256xf32>
    %159 = arith.addf %155, %158 : vector<8x256xf32>
    %cst_79 = arith.constant 0.000000e+00 : bf16
    %160 = vector.broadcast %cst_79 : bf16 to vector<8x1xbf16>
    %161 = vector.extract_strided_slice %114 {offsets = [0, 1], sizes = [8, 255], strides = [1, 1]} : vector<8x256xbf16> to vector<8x255xbf16>
    %162 = tpu.concatenate %161, %160 in 1 : vector<8x255xbf16>, vector<8x1xbf16> -> vector<8x256xbf16>
    %cst_80 = arith.constant 0.000000e+00 : bf16
    %163 = vector.broadcast %cst_80 : bf16 to vector<8x256xbf16>
    %164 = vector.shape_cast %22 : vector<1x256xi1> to vector<1x256xi1>
    %165 = vector.broadcast %164 : vector<1x256xi1> to vector<8x256xi1>
    %166 = arith.select %165, %162, %163 : vector<8x256xi1>, vector<8x256xbf16>
    %c5_81 = arith.constant 5 : index
    %c0_82 = arith.constant 0 : index
    %c0_83 = arith.constant 0 : index
    %167 = vector.load %arg4[%c5_81, %c0_82, %c0_83] : memref<9x8x8xbf16, #tpu.memory_space<vmem>>, vector<1x8x8xbf16>
    %168 = vector.shape_cast %167 : vector<1x8x8xbf16> to vector<8x8xbf16>
    %cst_84 = arith.constant dense<0.000000e+00> : vector<8x256xf32>
    %169 = tpu.matmul %168, %166, %cst_84 {dimension_numbers = #tpu.dot_dimension_numbers<[1], [0], [0], [1], [0, 0, 1, 1], [], []>} : vector<8x8xbf16>, vector<8x256xbf16>, vector<8x256xf32> -> vector<8x256xf32>
    %170 = arith.addf %159, %169 : vector<8x256xf32>
    %cst_85 = arith.constant 0.000000e+00 : bf16
    %171 = vector.broadcast %cst_85 : bf16 to vector<8x15xbf16>
    %172 = vector.extract_strided_slice %114 {offsets = [0, 15], sizes = [8, 241], strides = [1, 1]} : vector<8x256xbf16> to vector<8x241xbf16>
    %173 = tpu.concatenate %172, %171 in 1 : vector<8x241xbf16>, vector<8x15xbf16> -> vector<8x256xbf16>
    %cst_86 = arith.constant 0.000000e+00 : bf16
    %174 = vector.broadcast %cst_86 : bf16 to vector<8x256xbf16>
    %175 = vector.shape_cast %20 : vector<1x256xi1> to vector<1x256xi1>
    %176 = vector.broadcast %175 : vector<1x256xi1> to vector<8x256xi1>
    %177 = arith.select %176, %173, %174 : vector<8x256xi1>, vector<8x256xbf16>
    %c6_87 = arith.constant 6 : index
    %c0_88 = arith.constant 0 : index
    %c0_89 = arith.constant 0 : index
    %178 = vector.load %arg4[%c6_87, %c0_88, %c0_89] : memref<9x8x8xbf16, #tpu.memory_space<vmem>>, vector<1x8x8xbf16>
    %179 = vector.shape_cast %178 : vector<1x8x8xbf16> to vector<8x8xbf16>
    %cst_90 = arith.constant dense<0.000000e+00> : vector<8x256xf32>
    %180 = tpu.matmul %179, %177, %cst_90 {dimension_numbers = #tpu.dot_dimension_numbers<[1], [0], [0], [1], [0, 0, 1, 1], [], []>} : vector<8x8xbf16>, vector<8x256xbf16>, vector<8x256xf32> -> vector<8x256xf32>
    %181 = arith.addf %170, %180 : vector<8x256xf32>
    %cst_91 = arith.constant 0.000000e+00 : bf16
    %182 = vector.broadcast %cst_91 : bf16 to vector<8x16xbf16>
    %183 = vector.extract_strided_slice %114 {offsets = [0, 16], sizes = [8, 240], strides = [1, 1]} : vector<8x256xbf16> to vector<8x240xbf16>
    %184 = tpu.concatenate %183, %182 in 1 : vector<8x240xbf16>, vector<8x16xbf16> -> vector<8x256xbf16>
    %c7_92 = arith.constant 7 : index
    %c0_93 = arith.constant 0 : index
    %c0_94 = arith.constant 0 : index
    %185 = vector.load %arg4[%c7_92, %c0_93, %c0_94] : memref<9x8x8xbf16, #tpu.memory_space<vmem>>, vector<1x8x8xbf16>
    %186 = vector.shape_cast %185 : vector<1x8x8xbf16> to vector<8x8xbf16>
    %cst_95 = arith.constant dense<0.000000e+00> : vector<8x256xf32>
    %187 = tpu.matmul %186, %184, %cst_95 {dimension_numbers = #tpu.dot_dimension_numbers<[1], [0], [0], [1], [0, 0, 1, 1], [], []>} : vector<8x8xbf16>, vector<8x256xbf16>, vector<8x256xf32> -> vector<8x256xf32>
    %188 = arith.addf %181, %187 : vector<8x256xf32>
    %cst_96 = arith.constant 0.000000e+00 : bf16
    %189 = vector.broadcast %cst_96 : bf16 to vector<8x17xbf16>
    %190 = vector.extract_strided_slice %114 {offsets = [0, 17], sizes = [8, 239], strides = [1, 1]} : vector<8x256xbf16> to vector<8x239xbf16>
    %191 = tpu.concatenate %190, %189 in 1 : vector<8x239xbf16>, vector<8x17xbf16> -> vector<8x256xbf16>
    %cst_97 = arith.constant 0.000000e+00 : bf16
    %192 = vector.broadcast %cst_97 : bf16 to vector<8x256xbf16>
    %193 = vector.shape_cast %22 : vector<1x256xi1> to vector<1x256xi1>
    %194 = vector.broadcast %193 : vector<1x256xi1> to vector<8x256xi1>
    %195 = arith.select %194, %191, %192 : vector<8x256xi1>, vector<8x256xbf16>
    %c8_98 = arith.constant 8 : index
    %c0_99 = arith.constant 0 : index
    %c0_100 = arith.constant 0 : index
    %196 = vector.load %arg4[%c8_98, %c0_99, %c0_100] : memref<9x8x8xbf16, #tpu.memory_space<vmem>>, vector<1x8x8xbf16>
    %197 = vector.shape_cast %196 : vector<1x8x8xbf16> to vector<8x8xbf16>
    %cst_101 = arith.constant dense<0.000000e+00> : vector<8x256xf32>
    %198 = tpu.matmul %197, %195, %cst_101 {dimension_numbers = #tpu.dot_dimension_numbers<[1], [0], [0], [1], [0, 0, 1, 1], [], []>} : vector<8x8xbf16>, vector<8x256xbf16>, vector<8x256xf32> -> vector<8x256xf32>
    %199 = arith.addf %188, %198 : vector<8x256xf32>
    %c0_102 = arith.constant 0 : index
    %c0_103 = arith.constant 0 : index
    %200 = vector.load %arg5[%c0_102, %c0_103] : memref<8x1xf32, #tpu.memory_space<vmem>>, vector<8x1xf32>
    %201 = vector.broadcast %200 : vector<8x1xf32> to vector<8x256xf32>
    %202 = arith.addf %199, %201 : vector<8x256xf32>
    %cst_104 = arith.constant dense<0.000000e+00> : vector<8xf32>
    %203 = vector.multi_reduction <add>, %202, %cst_104 [1] : vector<8x256xf32> to vector<8xf32>
    %204 = vector.shape_cast %203 : vector<8xf32> to vector<8x1xf32>
    %cst_105 = arith.constant 2.560000e+02 : f32
    %205 = vector.broadcast %cst_105 : f32 to vector<8x1xf32>
    %206 = arith.divf %204, %205 : vector<8x1xf32>
    %c0_106 = arith.constant 0 : index
    %c0_107 = arith.constant 0 : index
    %207 = vector.load %arg6[%c0_106, %c0_107] : memref<8x2xf32, #tpu.memory_space<vmem>>, vector<8x2xf32>
    %208 = vector.broadcast %206 : vector<8x1xf32> to vector<8x2xf32>
    %209 = arith.mulf %207, %208 : vector<8x2xf32>
    %cst_108 = arith.constant dense<0.000000e+00> : vector<2xf32>
    %210 = vector.multi_reduction <add>, %209, %cst_108 [0] : vector<8x2xf32> to vector<2xf32>
    %211 = vector.shape_cast %210 : vector<2xf32> to vector<1x2xf32>
    %c0_109 = arith.constant 0 : index
    %c0_110 = arith.constant 0 : index
    %212 = vector.load %arg7[%c0_109, %c0_110] : memref<1x2xf32, #tpu.memory_space<vmem>>, vector<1x2xf32>
    %213 = arith.addf %211, %212 : vector<1x2xf32>
    %cst_111 = arith.constant 0.000000e+00 : f32
    %214 = vector.broadcast %cst_111 : f32 to vector<1x2xf32>
    %215 = arith.maximumf %213, %214 : vector<1x2xf32>
    %c0_112 = arith.constant 0 : index
    %c0_113 = arith.constant 0 : index
    %216 = vector.load %arg8[%c0_112, %c0_113] : memref<8x2xf32, #tpu.memory_space<vmem>>, vector<8x2xf32>
    %217 = vector.broadcast %215 : vector<1x2xf32> to vector<8x2xf32>
    %218 = arith.mulf %216, %217 : vector<8x2xf32>
    %cst_114 = arith.constant dense<0.000000e+00> : vector<8xf32>
    %219 = vector.multi_reduction <add>, %218, %cst_114 [1] : vector<8x2xf32> to vector<8xf32>
    %220 = vector.shape_cast %219 : vector<8xf32> to vector<8x1xf32>
    %c0_115 = arith.constant 0 : index
    %c0_116 = arith.constant 0 : index
    %221 = vector.load %arg9[%c0_115, %c0_116] : memref<8x1xf32, #tpu.memory_space<vmem>>, vector<8x1xf32>
    %222 = arith.addf %220, %221 : vector<8x1xf32>
    %223 = arith.negf %222 : vector<8x1xf32>
    %224 = math.exp %223 : vector<8x1xf32>
    %cst_117 = arith.constant 1.000000e+00 : f32
    %225 = vector.broadcast %cst_117 : f32 to vector<8x1xf32>
    %226 = arith.addf %225, %224 : vector<8x1xf32>
    %227 = arith.divf %225, %226 : vector<8x1xf32>
    %228 = vector.broadcast %227 : vector<8x1xf32> to vector<8x256xf32>
    %229 = arith.mulf %202, %228 : vector<8x256xf32>
    %230 = arith.mulf %202, %229 : vector<8x256xf32>
    %231 = arith.truncf %202 : vector<8x256xf32> to vector<8x256xbf16>
    %c0_118 = arith.constant 0 : index
    %c0_119 = arith.constant 0 : index
    %232 = vector.load %arg10[%c0_118, %c0_119] : memref<16x8xbf16, #tpu.memory_space<vmem>>, vector<16x8xbf16>
    %cst_120 = arith.constant dense<0.000000e+00> : vector<16x256xf32>
    %233 = tpu.matmul %232, %231, %cst_120 {dimension_numbers = #tpu.dot_dimension_numbers<[1], [0], [0], [1], [0, 0, 1, 1], [], []>} : vector<16x8xbf16>, vector<8x256xbf16>, vector<16x256xf32> -> vector<16x256xf32>
    %c0_121 = arith.constant 0 : index
    %c0_122 = arith.constant 0 : index
    %234 = vector.load %arg11[%c0_121, %c0_122] : memref<16x1xf32, #tpu.memory_space<vmem>>, vector<16x1xf32>
    %235 = vector.broadcast %234 : vector<16x1xf32> to vector<16x256xf32>
    %236 = arith.addf %233, %235 : vector<16x256xf32>
    %cst_123 = arith.constant 0.000000e+00 : f32
    %237 = vector.broadcast %cst_123 : f32 to vector<16x256xf32>
    %238 = arith.maximumf %236, %237 : vector<16x256xf32>
    %c0_124 = arith.constant 0 : index
    %c0_125 = arith.constant 0 : index
    %239 = vector.load %arg12[%c0_124, %c0_125] : memref<8x16xbf16, #tpu.memory_space<vmem>>, vector<8x16xbf16>
    %240 = arith.truncf %238 : vector<16x256xf32> to vector<16x256xbf16>
    %cst_126 = arith.constant dense<0.000000e+00> : vector<8x256xf32>
    %241 = tpu.matmul %239, %240, %cst_126 {dimension_numbers = #tpu.dot_dimension_numbers<[1], [0], [0], [1], [0, 0, 1, 1], [], []>} : vector<8x16xbf16>, vector<16x256xbf16>, vector<8x256xf32> -> vector<8x256xf32>
    %c0_127 = arith.constant 0 : index
    %c0_128 = arith.constant 0 : index
    %242 = vector.load %arg13[%c0_127, %c0_128] : memref<8x1xf32, #tpu.memory_space<vmem>>, vector<8x1xf32>
    %243 = vector.broadcast %242 : vector<8x1xf32> to vector<8x256xf32>
    %244 = arith.addf %241, %243 : vector<8x256xf32>
    %245 = arith.negf %244 : vector<8x256xf32>
    %246 = math.exp %245 : vector<8x256xf32>
    %cst_129 = arith.constant 1.000000e+00 : f32
    %247 = vector.broadcast %cst_129 : f32 to vector<8x256xf32>
    %248 = arith.addf %247, %246 : vector<8x256xf32>
    %249 = arith.divf %247, %248 : vector<8x256xf32>
    %250 = arith.mulf %202, %249 : vector<8x256xf32>
    %c0_130 = arith.constant 0 : index
    %c0_131 = arith.constant 0 : index
    %251 = vector.load %arg14[%c0_130, %c0_131] : memref<8x8xbf16, #tpu.memory_space<vmem>>, vector<8x8xbf16>
    %252 = arith.truncf %230 : vector<8x256xf32> to vector<8x256xbf16>
    %cst_132 = arith.constant dense<0.000000e+00> : vector<8x256xf32>
    %253 = tpu.matmul %251, %252, %cst_132 {dimension_numbers = #tpu.dot_dimension_numbers<[1], [0], [0], [1], [0, 0, 1, 1], [], []>} : vector<8x8xbf16>, vector<8x256xbf16>, vector<8x256xf32> -> vector<8x256xf32>
    %c0_133 = arith.constant 0 : index
    %c0_134 = arith.constant 0 : index
    %254 = vector.load %arg15[%c0_133, %c0_134] : memref<8x8xbf16, #tpu.memory_space<vmem>>, vector<8x8xbf16>
    %255 = arith.truncf %250 : vector<8x256xf32> to vector<8x256xbf16>
    %cst_135 = arith.constant dense<0.000000e+00> : vector<8x256xf32>
    %256 = tpu.matmul %254, %255, %cst_135 {dimension_numbers = #tpu.dot_dimension_numbers<[1], [0], [0], [1], [0, 0, 1, 1], [], []>} : vector<8x8xbf16>, vector<8x256xbf16>, vector<8x256xf32> -> vector<8x256xf32>
    %257 = arith.addf %253, %256 : vector<8x256xf32>
    %c0_136 = arith.constant 0 : index
    %c0_137 = arith.constant 0 : index
    %258 = vector.load %arg16[%c0_136, %c0_137] : memref<8x1xf32, #tpu.memory_space<vmem>>, vector<8x1xf32>
    %259 = vector.broadcast %258 : vector<8x1xf32> to vector<8x256xf32>
    %260 = arith.addf %257, %259 : vector<8x256xf32>
    %261 = arith.addf %1, %260 : vector<8x256xf32>
    %c0_138 = arith.constant 0 : index
    %c0_139 = arith.constant 0 : index
    %c0_140 = arith.constant 0 : index
    %262 = vector.load %arg17[%c0_138, %c0_139, %c0_140] : memref<1x8x256xf32, #tpu.memory_space<vmem>>, vector<1x8x256xf32>
    %263 = vector.shape_cast %262 : vector<1x8x256xf32> to vector<8x256xf32>
    %264 = vector.shape_cast %261 : vector<8x256xf32> to vector<1x8x256xf32>
    tpu.vector_store %arg17[%c0_138, %c0_139, %c0_140], %264 {strides = array<i32>} : memref<1x8x256xf32, #tpu.memory_space<vmem>>, vector<1x8x256xf32>,
    return
  }
  func.func @transform_0(%arg0: i32) -> (i32, i32, i32) {
    %c0_i32 = arith.constant 0 : i32
    %c0_i32_0 = arith.constant 0 : i32
    %c0_i32_1 = arith.constant 0 : i32
    return %arg0, %c0_i32, %c0_i32_0 : i32, i32, i32
  }
  func.func @transform_1(%arg0: i32) -> (i32, i32, i32) {
    %c0_i32 = arith.constant 0 : i32
    %c0_i32_0 = arith.constant 0 : i32
    %c0_i32_1 = arith.constant 0 : i32
    %c0_i32_2 = arith.constant 0 : i32
    return %c0_i32, %c0_i32_0, %c0_i32_1 : i32, i32, i32
  }
  func.func @transform_2(%arg0: i32) -> (i32, i32) {
    %c0_i32 = arith.constant 0 : i32
    %c0_i32_0 = arith.constant 0 : i32
    %c0_i32_1 = arith.constant 0 : i32
    return %c0_i32, %c0_i32_0 : i32, i32
  }
  func.func @transform_3(%arg0: i32) -> (i32, i32, i32) {
    %c0_i32 = arith.constant 0 : i32
    %c0_i32_0 = arith.constant 0 : i32
    %c0_i32_1 = arith.constant 0 : i32
    %c0_i32_2 = arith.constant 0 : i32
    return %c0_i32, %c0_i32_0, %c0_i32_1 : i32, i32, i32
  }
  func.func @transform_4(%arg0: i32) -> (i32, i32) {
    %c0_i32 = arith.constant 0 : i32
    %c0_i32_0 = arith.constant 0 : i32
    %c0_i32_1 = arith.constant 0 : i32
    return %c0_i32, %c0_i32_0 : i32, i32
  }
  func.func @transform_5(%arg0: i32) -> (i32, i32) {
    %c0_i32 = arith.constant 0 : i32
    %c0_i32_0 = arith.constant 0 : i32
    %c0_i32_1 = arith.constant 0 : i32
    return %c0_i32, %c0_i32_0 : i32, i32
  }
  func.func @transform_6(%arg0: i32) -> (i32, i32) {
    %c0_i32 = arith.constant 0 : i32
    %c0_i32_0 = arith.constant 0 : i32
    %c0_i32_1 = arith.constant 0 : i32
    return %c0_i32, %c0_i32_0 : i32, i32
  }
  func.func @transform_7(%arg0: i32) -> (i32, i32) {
    %c0_i32 = arith.constant 0 : i32
    %c0_i32_0 = arith.constant 0 : i32
    %c0_i32_1 = arith.constant 0 : i32
    return %c0_i32, %c0_i32_0 : i32, i32
  }
  func.func @transform_8(%arg0: i32) -> (i32, i32) {
    %c0_i32 = arith.constant 0 : i32
    %c0_i32_0 = arith.constant 0 : i32
    %c0_i32_1 = arith.constant 0 : i32
    return %c0_i32, %c0_i32_0 : i32, i32
  }
  func.func @transform_9(%arg0: i32) -> (i32, i32) {
    %c0_i32 = arith.constant 0 : i32
    %c0_i32_0 = arith.constant 0 : i32
    %c0_i32_1 = arith.constant 0 : i32
    return %c0_i32, %c0_i32_0 : i32, i32
  }
  func.func @transform_10(%arg0: i32) -> (i32, i32) {
    %c0_i32 = arith.constant 0 : i32
    %c0_i32_0 = arith.constant 0 : i32
    %c0_i32_1 = arith.constant 0 : i32
    return %c0_i32, %c0_i32_0 : i32, i32
  }
  func.func @transform_11(%arg0: i32) -> (i32, i32) {
    %c0_i32 = arith.constant 0 : i32
    %c0_i32_0 = arith.constant 0 : i32
    %c0_i32_1 = arith.constant 0 : i32
    return %c0_i32, %c0_i32_0 : i32, i32
  }
  func.func @transform_12(%arg0: i32) -> (i32, i32) {
    %c0_i32 = arith.constant 0 : i32
    %c0_i32_0 = arith.constant 0 : i32
    %c0_i32_1 = arith.constant 0 : i32
    return %c0_i32, %c0_i32_0 : i32, i32
  }
  func.func @transform_13(%arg0: i32) -> (i32, i32) {
    %c0_i32 = arith.constant 0 : i32
    %c0_i32_0 = arith.constant 0 : i32
    %c0_i32_1 = arith.constant 0 : i32
    return %c0_i32, %c0_i32_0 : i32, i32
  }
  func.func @transform_14(%arg0: i32) -> (i32, i32) {
    %c0_i32 = arith.constant 0 : i32
    %c0_i32_0 = arith.constant 0 : i32
    %c0_i32_1 = arith.constant 0 : i32
    return %c0_i32, %c0_i32_0 : i32, i32
  }
  func.func @transform_15(%arg0: i32) -> (i32, i32) {
    %c0_i32 = arith.constant 0 : i32
    %c0_i32_0 = arith.constant 0 : i32
    %c0_i32_1 = arith.constant 0 : i32
    return %c0_i32, %c0_i32_0 : i32, i32
  }
  func.func @transform_16(%arg0: i32) -> (i32, i32, i32) {
    %c0_i32 = arith.constant 0 : i32
    %c0_i32_0 = arith.constant 0 : i32
    %c0_i32_1 = arith.constant 0 : i32
    return %arg0, %c0_i32, %c0_i32_0 : i32, i32, i32
  }
}

</mosaic_0001>

<bundles_post_ra>
// kernel: csar_pallas.1
= control target key start
LH: loop header
LB: loop body
LE: loop exit
PB: predicated region body
PF: predicated region fallthrough
CT: control target
= control target key end

     0   :  { %s2326_s21 = smov 0   ;;  %s2722_s0 = inlined_call_operand.vmem [shape: f32[2,8,256], index: 0, kind: input, shape index: {}]   ;;  %s2723_s1 = inlined_call_operand.vmem [shape: bf16[9,8,8], index: 1, kind: input, shape index: {}]   ;;  %s2724_s2 = inlined_call_operand.vmem [shape: f32[8,1], index: 2, kind: input, shape index: {}]   ;;  %s2725_s3 = inlined_call_operand.vmem [shape: bf16[9,8,8], index: 3, kind: input, shape index: {}]   ;;  %s2726_s4 = inlined_call_operand.vmem [shape: f32[8,1], index: 4, kind: input, shape index: {}]   ;;  %s2727_s5 = inlined_call_operand.vmem [shape: f32[8,2], index: 5, kind: input, shape index: {}]   ;;  %s2728_s6 = inlined_call_operand.vmem [shape: f32[1,2], index: 6, kind: input, shape index: {}]   ;;  %s2729_s7 = inlined_call_operand.vmem [shape: f32[8,2], index: 7, kind: input, shape index: {}]   ;;  %s2730_s8 = inlined_call_operand.vmem [shape: f32[8,1], index: 8, kind: input, shape index: {}]   ;;  %s2731_s9 = inlined_call_operand.vmem [shape: bf16[16,8], index: 9, kind: input, shape index: {}]   ;;  %s2732_s10 = inlined_call_operand.vmem [shape: f32[16,1], index: 10, kind: input, shape index: {}]   ;;  %s2733_s11 = inlined_call_operand.vmem [shape: bf16[8,16], index: 11, kind: input, shape index: {}]   ;;  %s2734_s12 = inlined_call_operand.vmem [shape: f32[8,1], index: 12, kind: input, shape index: {}]   ;;  %s2735_s13 = inlined_call_operand.vmem [shape: bf16[8,8], index: 13, kind: input, shape index: {}]   ;;  %s2736_s14 = inlined_call_operand.vmem [shape: bf16[8,8], index: 14, kind: input, shape index: {}]   ;;  %s2737_s15 = inlined_call_operand.vmem [shape: f32[8,1], index: 15, kind: input, shape index: {}]   ;;  %s2738_s16 = inlined_call_operand.vmem [shape: f32[2,8,256], index: 16, kind: output, shape index: {}]  }
   0x1   :  { %2742 = sst [smem:[#allocation2_spill]] %s2722_s0 }
   0x2 LB: > { %s2114_s22 = sadd.s32 4294967295, %s2230_s21   ;;  %p2118_p0 = scmp.ge.s32.totalorder %s2230_s21, 1  ;;  %s2230_s21 = sphi %s2326_s21, %s26_s21  }
   0x3   : > { %p462_p1 = scmp.lt.s32.totalorder %s2230_s21, 3 }
   0x5   : > { %p463_p2 = pnand %p2118_p0, %p462_p1 }
   0x6   : > { %p512_p3 = scmp.lt.s32.totalorder (!%p463_p2), %s2114_s22, 1  ;;  %v2232_v0 = vmov (!%p463_p2), 0   ;;  %s2743_s26 = sld [smem:[#allocation2_spill]] (!%p463_p2)  ;;  %v1172_v5 = vld [vmem:[%s2724_s2] sm:$0xff] (!%p463_p2)  ;;  %v527_v6 = vlaneseq (!%p463_p2)  ;;  %vm566_vm6 = vcmask (!%p463_p2), 138240   ;;  %vm597_vm8 = vcmask (!%p463_p2), 130048  }
   0x7   : > { %466 = sbr.rel (%p463_p2) target bundleno = 1470 (0x5be), region = 84  ;;  %646 = vmatprep.mubr.bf16.mxu0 (!%p463_p2), %v2232_v0  ;;  %696 = vmatprep.mubr.bf16.mxu1 (!%p463_p2), %v2232_v0  ;;  %s2233_s28 = smov (!%p463_p2), 17   ;;  %vm608_vm9 = vcmask (!%p463_p2), 1043456   ;;  %vm709_vm11 = vcmask (!%p463_p2), 121856   ;;  %v2123_v34 = vld [vmem:[%s2723_s1 + $0x4] sm:$0xf] (!%p463_p2) }
   0x8   : > { %2207 = vset.pattern.permute.xlu0 (!%p463_p2), %v2232_v0  ;;  %2208 = vset.pattern.permute.xlu1 (!%p463_p2), %v2232_v0  ;;  %s2234_s29 = smov (!%p463_p2), 16   ;;  %s2235_s30 = smov (!%p463_p2), 15   ;;  %v528_v7 = vand.u32 (!%p463_p2), 127, %v527_v6  ;;  %v581_v11 = vshrl.u32 (!%p463_p2), %v527_v6, 7  ;;  %vm604_vm14 = vcmask (!%p463_p2), 64512   ;;  %vm792_vm15 = vcmask (!%p463_p2), 7168  }
   0x9   : > { %s2236_s0 = smov (!%p463_p2), 1   ;;  %s2237_s17 = smov (!%p463_p2), 127   ;;  %v592_v37 = vld [vmem:[%s2723_s1] sm:$0xf] (!%p463_p2)  ;;  %v2128_v50 = vld [vmem:[%s2723_s1 + $0x8] sm:$0xf] (!%p463_p2) }
   0xa   : > { %s2238_s18 = smov (!%p463_p2), 113   ;;  %s2239_s19 = smov (!%p463_p2), 112   ;;  %v529_v8 = vadd.s32 (!%p463_p2), 128, %v528_v7  ;;  %v534_v9 = vand.u32 (!%p463_p2), 15, %v528_v7  ;;  %v2389_v12 = vsub.s32 (!%p463_p2), 0, %v581_v11  ;;  %v586_v14 = vsub.s32 (!%p463_p2), 4, %v581_v11 }
   0xb   : > { %s2740_s20 = smov (!%p463_p2), 111   ;;  %v2131_v51 = vld [vmem:[%s2723_s1 + $0xc] sm:$0xf] (!%p463_p2)  ;;  %v1801_v33 = vld [vmem:[%s2732_s10] sm:$0xff] (!%p463_p2) }
   0xc   : > { %v541_v10 = vand.u32 (!%p463_p2), 15, %v529_v8  ;;  %vm554_vm0 = vcmp.ge.s32.totalorder (!%p463_p2), %v534_v9, 1  ;;  %vm556_vm3 = vcmp.lt.s32.totalorder (!%p463_p2), %v534_v9, 15 }
   0xe   : > { %s2751_s22 = smov (!%p512_p3, %s2114_s22), 1  ;;  %vm555_vm1 = vcmp.ge.s32.totalorder %v541_v10, 1  ;;  %vm557_vm4 = vcmp.lt.s32.totalorder %v541_v10, 15 }
   0xf   : > { %s2739_s23 = sshll.u32 %s2751_s22, 4  ;;  %vm578_vm2 = vmpackc.low %vm555_vm1, %vm554_vm0  ;;  %vm913_vm0 = vcmask 1039360   ;;  %vm980_vm1 = vcmask 924672   ;;  %s2749_s24 = sshll.u32 %s2751_s22, 4 }
  0x10   : > { %s2346_s27 = scalar_lea.vmem %s2743_s26, %s2739_s23  ;;  %v579_v13 = vsel %vm578_vm2, 65537, %v2232_v0  ;;  %vm720_vm5 = vmpackc.low %vm557_vm4, %vm556_vm3  ;;  %vm1047_vm2 = vcmask 916480   ;;  %vm1109_vm3 = vcmask 908288   ;;  %vm1760_vm4 = vcmask 15360  }
  0x11   : > { %v525_v1 = vld [vmem:[%s2346_s27] sm:$0xff]  ;;  %v526_v2 = vld [vmem:[%s2346_s27 + $0x8] sm:$0xff]  ;;  %v583_v15 = vrot.slane %v579_v13, %v2389_v12  ;;  %v2393_v16 = vrot.slane %v579_v13, %v586_v14  ;;  %v721_v20 = vsel %vm720_vm5, 65537, %v2232_v0 }
  0x12   : > { %v2350_v3 = vpack.c.bf16 %v525_v1, %v525_v1  ;;  %v2356_v4 = vpack.c.bf16 %v526_v2, %v526_v2  ;;  %v725_v24 = vrot.slane %v721_v20, %v2389_v12  ;;  %v2406_v25 = vrot.slane %v721_v20, %v586_v14  ;;  %v2140_v20 = vld [vmem:[%s2723_s1 + $0x18] sm:$0xf] }
  0x13   : > { %vm2395_vm7 = vcmp.ne.s16.totalorder %v583_v15, 0  ;;  %vm589_vm10 = vcmp.ne.s16.totalorder %v2393_v16, 0 }
  0x14   : > { %562 = vrot.lane.b32.xlu1 %v2350_v3, %s2233_s28  ;;  %593 = vrot.lane.b32.xlu0 %v2350_v3, %s2234_s29  ;;  %vm2416_vm12 = vcmp.ne.s16.totalorder %v725_v24, 0  ;;  %vm731_vm13 = vcmp.ne.s16.totalorder %v2406_v25, 0  ;;  %v861_v54 = vsel %vm608_vm9, %v2350_v3, 0  ;;  %v2172_v25 = vld [vmem:[%s2725_s3 + $0x20] sm:$0xf] }
  0x18   : > { %564 = vrot.lane.b32.xlu1 %v2356_v4, %s2233_s28  ;;  %595 = vrot.lane.b32.xlu0 %v2356_v4, %s2234_s29 }
  0x1c   : > { %707 = vrot.lane.b32.xlu1 %v2356_v4, %s2235_s30  ;;  %705 = vrot.lane.b32.xlu0 %v2350_v3, %s2235_s30 }
  0x20   : > { %790 = vrot.lane.b32.xlu1 %v2356_v4, %s2236_s0  ;;  %788 = vrot.lane.b32.xlu0 %v2350_v3, %s2236_s0 }
  0x24   : > { %911 = vrot.lane.b32.xlu1 %v2356_v4, %s2237_s17  ;;  %909 = vrot.lane.b32.xlu0 %v2350_v3, %s2237_s17 }
  0x28   : > { %978 = vrot.lane.b32.xlu1 %v2356_v4, %s2238_s18  ;;  %976 = vrot.lane.b32.xlu0 %v2350_v3, %s2238_s18 }
  0x2c   : > { %1045 = vrot.lane.b32.xlu1 %v2356_v4, %s2239_s19  ;;  %1043 = vrot.lane.b32.xlu0 %v2350_v3, %s2239_s19 }
  0x30   : > { %1107 = vrot.lane.b32.xlu1 %v2356_v4, %s2740_s20  ;;  %1105 = vrot.lane.b32.xlu0 %v2350_v3, %s2740_s20  ;;  %v2134_v3 = vld [vmem:[%s2723_s1 + $0x10] sm:$0xf] }
  0x34   : > { %1175 = vperm.xlu0 %2207, %v1172_v5  }
  0x86   : > { %v563_v18 = vpop.permute.xlu1 %562  ;;  %v594_v19 = vpop.permute.xlu0 %593 }
  0x87   : > { %v572_v21 = vsel %vm566_vm6, 0, %v563_v18  ;;  %v601_v23 = vsel %vm597_vm8, 0, %v594_v19 }
  0x88   : > { %v590_v22 = vsel %vm2395_vm7, %v572_v21, 0  ;;  %v609_v31 = vsel %vm608_vm9, %v601_v23, 0  ;;  %v2143_v21 = vld [vmem:[%s2723_s1 + $0x1c] sm:$0xf]  ;;  %v2146_v23 = vld [vmem:[%s2723_s1 + $0x20] sm:$0xf] }
  0x89   : > { %v659_v30 = vsel %vm608_vm9, %v590_v22, 0 }
  0x8a   : > { %v565_v26 = vpop.permute.xlu1 %564  ;;  %v596_v27 = vpop.permute.xlu0 %595 }
  0x8b   : > { %v598_v28 = vsel %vm597_vm8, %v594_v19, %v596_v27  ;;  %v567_v29 = vsel %vm566_vm6, %v563_v18, %v565_v26 }
  0x8c   : > { %2124 = vmatprep.subr.msk.bf16.mxu0 %vm608_vm9, %v598_v28  ;;  %v591_v32 = vsel %vm589_vm10, %v567_v29, 0 }
  0x8d   : > { %615 = vmatpush1.bf16.msra.mxu0 %v609_v31  ;;  %2126 = vmatprep.subr.msk.bf16.mxu1 %vm608_vm9, %v591_v32 }
  0x8e   : > { %665 = vmatpush1.bf16.msra.mxu1 %v659_v30  ;;  %v708_v35 = vpop.permute.xlu1 %707  ;;  %v706_v36 = vpop.permute.xlu0 %705 }
  0x8f   : > { %v710_v38 = vsel %vm709_vm11, %v706_v36, %v708_v35  ;;  %v714_v39 = vsel %vm709_vm11, 0, %v706_v36 }
  0x90   : > { %v732_v40 = vsel %vm2416_vm12, %v714_v39, 0  ;;  %v733_v41 = vsel %vm731_vm13, %v710_v38, 0  ;;  %2125 = vmatmul.mubr.msk.bf16.vlgmr.msra.gmra.mrb[0].mxu0 %vm604_vm14, %v2123_v34 }
  0x91   : > { %2127 = vmatmul.mubr.msk.bf16.vlgmr.msra.gmra.mrb[0].mxu1 %vm604_vm14, %v592_v37  ;;  %2129 = vmatprep.subr.msk.bf16.mxu0 %vm608_vm9, %v733_v41  ;;  %v740_v42 = vsel %vm608_vm9, %v732_v40, 0 }
  0x92   : > { %v791_v43 = vpop.permute.xlu1 %790  ;;  %v789_v44 = vpop.permute.xlu0 %788  ;;  %746 = vmatpush1.bf16.msra.mxu0 %v740_v42  ;;  %777 = vmatprep.mubr.bf16.mxu0 %v2232_v0 }
  0x93   : > { %v793_v45 = vsel %vm792_vm15, %v789_v44, %v791_v43  ;;  %v797_v46 = vsel %vm792_vm15, 0, %v789_v44  ;;  %844 = vmatprep.mubr.bf16.mxu1 %v2232_v0  ;;  %2135 = vmatprep.subr.msk.bf16.mxu0 %vm608_vm9, %v2356_v4  ;;  %v2137_v4 = vld [vmem:[%s2723_s1 + $0x14] sm:$0xf] }
  0x94   : > { %v799_v47 = vsel %vm2395_vm7, %v797_v46, 0  ;;  %v800_v48 = vsel %vm589_vm10, %v793_v45, 0 }
  0x95   : > { %2132 = vmatprep.subr.msk.bf16.mxu1 %vm608_vm9, %v800_v48  ;;  %v807_v49 = vsel %vm608_vm9, %v799_v47, 0 }
  0x96   : > { %813 = vmatpush1.bf16.msra.mxu1 %v807_v49  ;;  %v912_v52 = vpop.permute.xlu1 %911  ;;  %v910_v53 = vpop.permute.xlu0 %909 }
  0x97   : > { %v918_v55 = vsel %vm913_vm0, %v912_v52, 0  ;;  %v914_v56 = vsel %vm913_vm0, %v910_v53, %v912_v52 }
  0x98   : > { %2130 = vmatmul.mubr.msk.bf16.vlgmr.msra.gmra.mrb[4].mxu0 %vm604_vm14, %v2128_v50  ;;  %v921_v57 = vsel %vm731_vm13, %v918_v55, 0  ;;  %v920_v58 = vsel %vm2416_vm12, %v914_v56, 0 }
  0x99   : > { %2133 = vmatmul.mubr.msk.bf16.vlgmr.msra.gmra.mrb[4].mxu1 %vm604_vm14, %v2131_v51  ;;  %867 = vmatpush1.bf16.msra.mxu0 %v861_v54  ;;  %v928_v59 = vsel %vm608_vm9, %v920_v58, 0 }
  0x9a   : > { %2138 = vmatprep.subr.msk.bf16.mxu1 %vm608_vm9, %v921_v57  ;;  %898 = vmatprep.mubr.bf16.mxu0 %v2232_v0  ;;  %v979_v60 = vpop.permute.xlu1 %978  ;;  %v977_v61 = vpop.permute.xlu0 %976 }
  0x9b   : > { %934 = vmatpush1.bf16.msra.mxu1 %v928_v59  ;;  %v985_v62 = vsel %vm980_vm1, %v979_v60, 0  ;;  %v981_v63 = vsel %vm980_vm1, %v977_v61, %v979_v60  ;;  %965 = vmatprep.mubr.bf16.mxu1 %v2232_v0 }
  0x9c   : > { %v988_v1 = vsel %vm589_vm10, %v985_v62, 0  ;;  %v987_v2 = vsel %vm2395_vm7, %v981_v63, 0 }
  0x9d   : > { %2141 = vmatprep.subr.msk.bf16.mxu0 %vm608_vm9, %v988_v1  ;;  %v995_v7 = vsel %vm608_vm9, %v987_v2, 0 }
  0x9e   : > { %v1046_v5 = vpop.permute.xlu1 %1045  ;;  %v1044_v6 = vpop.permute.xlu0 %1043 }
  0x9f   : > { %v1051_v8 = vsel %vm1047_vm2, %v1046_v5, 0  ;;  %v1048_v9 = vsel %vm1047_vm2, %v1044_v6, %v1046_v5 }
  0xa0   : > { %2136 = vmatmul.mubr.msk.bf16.vlgmr.msra.gmra.mrb[8].mxu0 %vm604_vm14, %v2134_v3  ;;  %v1058_v10 = vsel %vm608_vm9, %v1048_v9, 0  ;;  %2144 = vmatprep.subr.msk.bf16.mxu1 %vm608_vm9, %v1051_v8 }
  0xa1   : > { %2139 = vmatmul.mubr.msk.bf16.vlgmr.msra.gmra.mrb[8].mxu1 %vm604_vm14, %v2137_v4  ;;  %1001 = vmatpush1.bf16.msra.mxu0 %v995_v7 }
  0xa2   : > { %1032 = vmatprep.mubr.bf16.mxu0 %v2232_v0  ;;  %1063 = vmatpush1.bf16.msra.mxu1 %v1058_v10  ;;  %v1108_v11 = vpop.permute.xlu1 %1107  ;;  %v1106_v13 = vpop.permute.xlu0 %1105 }
  0xa3   : > { %v1114_v14 = vsel %vm1109_vm3, %v1108_v11, 0  ;;  %1094 = vmatprep.mubr.bf16.mxu1 %v2232_v0  ;;  %v1110_v15 = vsel %vm1109_vm3, %v1106_v13, %v1108_v11 }
  0xa4   : > { %v1117_v18 = vsel %vm731_vm13, %v1114_v14, 0  ;;  %v1116_v19 = vsel %vm2416_vm12, %v1110_v15, 0 }
  0xa5   : > { %2147 = vmatprep.subr.msk.bf16.mxu0 %vm608_vm9, %v1117_v18  ;;  %v1124_v22 = vsel %vm608_vm9, %v1116_v19, 0 }
  0xa8   : > { %2142 = vmatmul.mubr.msk.bf16.vlgmr.msra.gmra.mrb[12].mxu0 %vm604_vm14, %v2140_v20 }
  0xa9   : > { %2145 = vmatmul.mubr.msk.bf16.vlgmr.msra.gmra.mrb[12].mxu1 %vm604_vm14, %v2143_v21  ;;  %1130 = vmatpush1.bf16.msra.mxu0 %v1124_v22 }
  0xaa   : > { %1161 = vmatprep.mubr.bf16.mxu0 %v2232_v0  ;;  %1247 = vmatprep.mubr.bf16.mxu1 %v2232_v0 }
  0xb0   : > { %2148 = vmatmul.mubr.msk.bf16.vlgmr.msra.gmra.mrb[16].mxu0 %vm604_vm14, %v2146_v23 }
  0xb1   : > { %1297 = vmatprep.mubr.bf16.mxu0 %v2232_v0 }
  0xb3   : > { %v1176_v10 = vpop.permute.xlu0 %1175 }
 0x163   : > { %v648_v24 = vpop.f32.mrb[0].mxu0 }
 0x164   : > { %v650_v26 = vpop.f32.mrb[1].mxu0  ;;  %v698_v27 = vpop.f32.mrb[0].mxu1 }
 0x165   : > { %v699_v28 = vadd.f32 %v698_v27, %v648_v24  ;;  %v652_v29 = vpop.f32.mrb[2].mxu0  ;;  %v700_v30 = vpop.f32.mrb[1].mxu1  ;;  %v1802_v27 = vld [vmem:[%s2732_s10 + $0x8] sm:$0xff] }
 0x166   : > { %v701_v31 = vadd.f32 %v700_v30, %v650_v26  ;;  %v653_v32 = vpop.f32.mrb[3].mxu0  ;;  %v702_v34 = vpop.f32.mrb[2].mxu1  ;;  %v1745_v26 = vld [vmem:[%s2726_s4] sm:$0xff] }
 0x167   : > { %v703_v35 = vpop.f32.mrb[3].mxu1 }
 0x16b   : > { %v779_v36 = vpop.f32.mrb[4].mxu0 }
 0x16c   : > { %v786_v37 = vadd.f32 %v779_v36, %v699_v28  ;;  %v781_v38 = vpop.f32.mrb[5].mxu0  ;;  %v846_v39 = vpop.f32.mrb[4].mxu1 }
 0x16d   : > { %v787_v40 = vadd.f32 %v781_v38, %v701_v31  ;;  %v783_v41 = vpop.f32.mrb[6].mxu0  ;;  %v848_v42 = vpop.f32.mrb[5].mxu1 }
 0x16e   : > { %v853_v43 = vadd.f32 %v846_v39, %v786_v37  ;;  %v784_v44 = vpop.f32.mrb[7].mxu0  ;;  %v850_v45 = vpop.f32.mrb[6].mxu1  ;;  %v2149_v37 = vld [vmem:[%s2725_s3 + $0x4] sm:$0xf] }
 0x16f   : > { %v854_v46 = vadd.f32 %v848_v42, %v787_v40  ;;  %v851_v47 = vpop.f32.mrb[7].mxu1 }
 0x170   : > { %v1197_v47 = vld [vmem:[%s2725_s3] sm:$0xf] }
 0x173   : > { %v900_v48 = vpop.f32.mrb[8].mxu0 }
 0x174   : > { %v907_v49 = vadd.f32 %v900_v48, %v853_v43  ;;  %v902_v50 = vpop.f32.mrb[9].mxu0  ;;  %v967_v51 = vpop.f32.mrb[8].mxu1 }
 0x175   : > { %v908_v52 = vadd.f32 %v902_v50, %v854_v46  ;;  %v904_v53 = vpop.f32.mrb[10].mxu0  ;;  %v969_v54 = vpop.f32.mrb[9].mxu1 }
 0x176   : > { %v974_v55 = vadd.f32 %v967_v51, %v907_v49  ;;  %v905_v56 = vpop.f32.mrb[11].mxu0  ;;  %v971_v57 = vpop.f32.mrb[10].mxu1 }
 0x177   : > { %v975_v58 = vadd.f32 %v969_v54, %v908_v52  ;;  %v972_v59 = vpop.f32.mrb[11].mxu1 }
 0x17b   : > { %v1034_v60 = vpop.f32.mrb[12].mxu0 }
 0x17c   : > { %v1041_v61 = vadd.f32 %v1034_v60, %v974_v55  ;;  %v1036_v62 = vpop.f32.mrb[13].mxu0  ;;  %v1096_v63 = vpop.f32.mrb[12].mxu1  ;;  %v2154_v55 = vld [vmem:[%s2725_s3 + $0x8] sm:$0xf] }
 0x17d   : > { %v1042_v1 = vadd.f32 %v1036_v62, %v975_v58  ;;  %v1038_v2 = vpop.f32.mrb[14].mxu0  ;;  %v1098_v3 = vpop.f32.mrb[13].mxu1  ;;  %v2157_v62 = vld [vmem:[%s2725_s3 + $0xc] sm:$0xf] }
 0x17e   : > { %v1103_v4 = vadd.f32 %v1096_v63, %v1041_v61  ;;  %v1039_v5 = vpop.f32.mrb[15].mxu0  ;;  %v1100_v6 = vpop.f32.mrb[14].mxu1 }
 0x17f   : > { %v1104_v7 = vadd.f32 %v1098_v3, %v1042_v1  ;;  %v1101_v8 = vpop.f32.mrb[15].mxu1  ;;  %v2160_v6 = vld [vmem:[%s2725_s3 + $0x10] sm:$0xf] }
 0x183   : > { %v1163_v9 = vpop.f32.mrb[16].mxu0 }
 0x184   : > { %v1170_v11 = vadd.f32 %v1163_v9, %v1103_v4  ;;  %v1165_v13 = vpop.f32.mrb[17].mxu0 }
 0x185   : > { %v1171_v14 = vadd.f32 %v1165_v13, %v1104_v7  ;;  %v1167_v15 = vpop.f32.mrb[18].mxu0 }
 0x186   : > { %v1178_v18 = vadd.f32 %v1176_v10, %v1170_v11  ;;  %v1168_v19 = vpop.f32.mrb[19].mxu0  ;;  %v2163_v15 = vld [vmem:[%s2725_s3 + $0x14] sm:$0xf] }
 0x187   : > { %v1179_v20 = vadd.f32 %v1176_v10, %v1171_v14 }
 0x188   : > { %v1180_v21 = vmax.f32 %v1178_v18, 0.0 }
 0x189   : > { %v1181_v22 = vmax.f32 %v1179_v20, 0.0 }
 0x18a   : > { %v2514_v23 = vpack.c.bf16 %v1180_v21, %v1180_v21  ;;  %v2166_v21 = vld [vmem:[%s2725_s3 + $0x18] sm:$0xf] }
 0x18b   : > { %v1183_v24 = vpack.c.bf16 %v1181_v22, %v1181_v22 }
 0x18c   : > { %1186 = vrot.lane.b32.xlu0 %v2514_v23, %s2233_s28  ;;  %1198 = vrot.lane.b32.xlu1 %v2514_v23, %s2234_s29  ;;  %v1442_v59 = vsel %vm608_vm9, %v2514_v23, 0 }
 0x190   : > { %1306 = vrot.lane.b32.xlu0 %v2514_v23, %s2235_s30  ;;  %1200 = vrot.lane.b32.xlu1 %v1183_v24, %s2234_s29  ;;  %s2748_s29 = smov 111  }
 0x194   : > { %1371 = vrot.lane.b32.xlu0 %v2514_v23, %s2236_s0  ;;  %1188 = vrot.lane.b32.xlu1 %v1183_v24, %s2233_s28 }
 0x198   : > { %1490 = vrot.lane.b32.xlu0 %v2514_v23, %s2237_s17  ;;  %1308 = vrot.lane.b32.xlu1 %v1183_v24, %s2235_s30 }
 0x19c   : > { %1555 = vrot.lane.b32.xlu0 %v2514_v23, %s2238_s18  ;;  %1373 = vrot.lane.b32.xlu1 %v1183_v24, %s2236_s0 }
 0x1a0   : > { %1620 = vrot.lane.b32.xlu0 %v2514_v23, %s2239_s19  ;;  %1492 = vrot.lane.b32.xlu1 %v1183_v24, %s2237_s17 }
 0x1a4   : > { %1680 = vrot.lane.b32.xlu0 %v2514_v23, %s2748_s29  ;;  %1557 = vrot.lane.b32.xlu1 %v1183_v24, %s2238_s18 }
 0x1a8   : > { %1748 = vperm.xlu0 %2207, %v1745_v26   ;;  %1622 = vrot.lane.b32.xlu1 %v1183_v24, %s2239_s19 }
 0x1ac   : > { %1810 = vperm.xlu0 %2207, %v1802_v27   ;;  %1682 = vrot.lane.b32.xlu1 %v1183_v24, %s2748_s29  ;;  %s521_s29 = scalar_lea.vmem %s2738_s16, %s2749_s24 }
 0x1b0   : > { %1805 = vperm.xlu1 %2208, %v1801_v33   ;;  %v1758_v33 = vld [vmem:[%s2727_s5] sm:$0xff] }
 0x1fe   : > { %v1187_v28 = vpop.permute.xlu0 %1186  ;;  %v1199_v29 = vpop.permute.xlu1 %1198 }
 0x1ff   : > { %v1204_v30 = vsel %vm597_vm8, 0, %v1199_v29  ;;  %v1193_v34 = vsel %vm566_vm6, 0, %v1187_v28 }
 0x200   : > { %v1210_v36 = vsel %vm608_vm9, %v1204_v30, 0  ;;  %v1195_v38 = vsel %vm2395_vm7, %v1193_v34, 0 }
 0x201   : > { %v1260_v44 = vsel %vm608_vm9, %v1195_v38, 0 }
 0x202   : > { %v1307_v31 = vpop.permute.xlu0 %1306  ;;  %v1201_v32 = vpop.permute.xlu1 %1200 }
 0x203   : > { %v1202_v35 = vsel %vm597_vm8, %v1199_v29, %v1201_v32  ;;  %v1313_v41 = vsel %vm709_vm11, 0, %v1307_v31 }
 0x204   : > { %2150 = vmatprep.subr.msk.bf16.mxu1 %vm608_vm9, %v1202_v35  ;;  %v1315_v45 = vsel %vm2416_vm12, %v1313_v41, 0 }
 0x205   : > { %1216 = vmatpush1.bf16.msra.mxu1 %v1210_v36  ;;  %v1323_v52 = vsel %vm608_vm9, %v1315_v45, 0 }
 0x206   : > { %v1372_v39 = vpop.permute.xlu0 %1371  ;;  %v1189_v40 = vpop.permute.xlu1 %1188 }
 0x207   : > { %v1190_v42 = vsel %vm566_vm6, %v1187_v28, %v1189_v40  ;;  %v1378_v48 = vsel %vm792_vm15, 0, %v1372_v39  ;;  %v2169_v28 = vld [vmem:[%s2725_s3 + $0x1c] sm:$0xf] }
 0x208   : > { %v1196_v43 = vsel %vm589_vm10, %v1190_v42, 0  ;;  %2151 = vmatmul.mubr.msk.bf16.vlgmr.msra.gmra.mrb[16].mxu1 %vm604_vm14, %v2149_v37  ;;  %v1380_v53 = vsel %vm2395_vm7, %v1378_v48, 0 }
 0x209   : > { %2152 = vmatprep.subr.msk.bf16.mxu0 %vm608_vm9, %v1196_v43  ;;  %1360 = vmatprep.mubr.bf16.mxu1 %v2232_v0  ;;  %v1388_v58 = vsel %vm608_vm9, %v1380_v53, 0 }
 0x20a   : > { %1266 = vmatpush1.bf16.msra.mxu0 %v1260_v44  ;;  %v1309_v46 = vpop.permute.xlu1 %1308  ;;  %v1491_v50 = vpop.permute.xlu0 %1490 }
 0x20b   : > { %v1310_v49 = vsel %vm709_vm11, %v1307_v31, %v1309_v46 }
 0x20c   : > { %v1316_v51 = vsel %vm731_vm13, %v1310_v49, 0 }
 0x20d   : > { %2153 = vmatmul.mubr.msk.bf16.vlgmr.msra.gmra.mrb[20].mxu0 %vm604_vm14, %v1197_v47  ;;  %2155 = vmatprep.subr.msk.bf16.mxu1 %vm608_vm9, %v1316_v51 }
 0x20e   : > { %1329 = vmatpush1.bf16.msra.mxu1 %v1323_v52  ;;  %v1374_v54 = vpop.permute.xlu1 %1373  ;;  %1425 = vmatprep.mubr.bf16.mxu0 %v2232_v0  ;;  %v1556_v60 = vpop.permute.xlu0 %1555 }
 0x20f   : > { %v1375_v56 = vsel %vm792_vm15, %v1372_v39, %v1374_v54  ;;  %2161 = vmatprep.subr.msk.bf16.mxu1 %vm608_vm9, %v1183_v24 }
 0x210   : > { %v1381_v57 = vsel %vm589_vm10, %v1375_v56, 0 }
 0x211   : > { %2156 = vmatmul.mubr.msk.bf16.vlgmr.msra.gmra.mrb[20].mxu1 %vm604_vm14, %v2154_v55  ;;  %2158 = vmatprep.subr.msk.bf16.mxu0 %vm608_vm9, %v1381_v57 }
 0x212   : > { %1394 = vmatpush1.bf16.msra.mxu0 %v1388_v58  ;;  %1448 = vmatpush1.bf16.msra.mxu1 %v1442_v59  ;;  %v1493_v61 = vpop.permute.xlu1 %1492  ;;  %v1621_v9 = vpop.permute.xlu0 %1620 }
 0x213   : > { %v1494_v63 = vsel %vm913_vm0, %v1491_v50, %v1493_v61  ;;  %v1497_v1 = vsel %vm913_vm0, %v1493_v61, 0  ;;  %1479 = vmatprep.mubr.bf16.mxu1 %v2232_v0 }
 0x214   : > { %v1499_v2 = vsel %vm2416_vm12, %v1494_v63, 0  ;;  %v1500_v3 = vsel %vm731_vm13, %v1497_v1, 0 }
 0x215   : > { %2159 = vmatmul.mubr.msk.bf16.vlgmr.msra.gmra.mrb[24].mxu0 %vm604_vm14, %v2157_v62  ;;  %2164 = vmatprep.subr.msk.bf16.mxu0 %vm608_vm9, %v1500_v3  ;;  %v1507_v4 = vsel %vm608_vm9, %v1499_v2, 0 }
 0x216   : > { %1513 = vmatpush1.bf16.msra.mxu0 %v1507_v4  ;;  %v1558_v5 = vpop.permute.xlu1 %1557  ;;  %1544 = vmatprep.mubr.bf16.mxu0 %v2232_v0  ;;  %v1681_v19 = vpop.permute.xlu0 %1680 }
 0x217   : > { %v1559_v7 = vsel %vm980_vm1, %v1556_v60, %v1558_v5  ;;  %v1562_v8 = vsel %vm980_vm1, %v1558_v5, 0 }
 0x218   : > { %v1564_v10 = vsel %vm2395_vm7, %v1559_v7, 0  ;;  %v1565_v11 = vsel %vm589_vm10, %v1562_v8, 0 }
 0x219   : > { %2162 = vmatmul.mubr.msk.bf16.vlgmr.msra.gmra.mrb[24].mxu1 %vm604_vm14, %v2160_v6  ;;  %2167 = vmatprep.subr.msk.bf16.mxu1 %vm608_vm9, %v1565_v11  ;;  %v1572_v13 = vsel %vm608_vm9, %v1564_v10, 0 }
 0x21a   : > { %1578 = vmatpush1.bf16.msra.mxu1 %v1572_v13  ;;  %v1623_v14 = vpop.permute.xlu1 %1622  ;;  %1609 = vmatprep.mubr.bf16.mxu1 %v2232_v0 }
 0x21b   : > { %v1624_v17 = vsel %vm1047_vm2, %v1621_v9, %v1623_v14  ;;  %v1626_v18 = vsel %vm1047_vm2, %v1623_v14, 0 }
 0x21c   : > { %v1633_v16 = vsel %vm608_vm9, %v1624_v17, 0  ;;  %2170 = vmatprep.subr.msk.bf16.mxu0 %vm608_vm9, %v1626_v18 }
 0x21d   : > { %2165 = vmatmul.mubr.msk.bf16.vlgmr.msra.gmra.mrb[28].mxu0 %vm604_vm14, %v2163_v15 }
 0x21e   : > { %1638 = vmatpush1.bf16.msra.mxu0 %v1633_v16  ;;  %v1683_v20 = vpop.permute.xlu1 %1682  ;;  %1669 = vmatprep.mubr.bf16.mxu0 %v2232_v0 }
 0x21f   : > { %v1684_v22 = vsel %vm1109_vm3, %v1681_v19, %v1683_v20  ;;  %v1687_v23 = vsel %vm1109_vm3, %v1683_v20, 0 }
 0x220   : > { %v1689_v24 = vsel %vm2416_vm12, %v1684_v22, 0  ;;  %v1690_v26 = vsel %vm731_vm13, %v1687_v23, 0 }
 0x221   : > { %2168 = vmatmul.mubr.msk.bf16.vlgmr.msra.gmra.mrb[28].mxu1 %vm604_vm14, %v2166_v21  ;;  %2173 = vmatprep.subr.msk.bf16.mxu1 %vm608_vm9, %v1690_v26  ;;  %v1697_v27 = vsel %vm608_vm9, %v1689_v24, 0 }
 0x222   : > { %1703 = vmatpush1.bf16.msra.mxu1 %v1697_v27  ;;  %1734 = vmatprep.mubr.bf16.mxu1 %v2232_v0 }
 0x225   : > { %2171 = vmatmul.mubr.msk.bf16.vlgmr.msra.gmra.mrb[32].mxu0 %vm604_vm14, %v2169_v28  ;;  %v2209_v28 = vld [vmem:[%s2731_s9] sm:$0xff]  }
 0x226   : > { %1859 = vmatprep.mubr.bf16.mxu0 %v2232_v0 }
 0x227   : > { %v1749_v18 = vpop.permute.xlu0 %1748 }
 0x229   : > { %2174 = vmatmul.mubr.msk.bf16.vlgmr.msra.gmra.mrb[32].mxu1 %vm604_vm14, %v2172_v25 }
 0x22a   : > { %1918 = vmatprep.mubr.bf16.mxu1 %v2232_v0 }
 0x22f   : > { %v1806_v25 = vpop.permute.xlu1 %1805 }
 0x2db   : > { %v1249_v29 = vpop.f32.mrb[16].mxu1 }
 0x2dc   : > { %v1251_v30 = vpop.f32.mrb[17].mxu1 }
 0x2dd   : > { %v1253_v31 = vpop.f32.mrb[18].mxu1 }
 0x2de   : > { %v1254_v32 = vpop.f32.mrb[19].mxu1 }
 0x2e0   : > { %v1299_v34 = vpop.f32.mrb[20].mxu0 }
 0x2e1   : > { %v1300_v35 = vadd.f32 %v1299_v34, %v1249_v29  ;;  %v1301_v36 = vpop.f32.mrb[21].mxu0 }
 0x2e2   : > { %v1302_v37 = vadd.f32 %v1301_v36, %v1251_v30  ;;  %v1303_v38 = vpop.f32.mrb[22].mxu0 }
 0x2e3   : > { %v1304_v39 = vpop.f32.mrb[23].mxu0 }
 0x2e4   : > { %v1362_v40 = vpop.f32.mrb[20].mxu1  ;;  %v1768_v39 = vld [vmem:[%s2728_s6] sm:$0x1] }
 0x2e5   : > { %v1369_v41 = vadd.f32 %v1362_v40, %v1300_v35  ;;  %v1364_v42 = vpop.f32.mrb[21].mxu1 }
 0x2e6   : > { %v1370_v43 = vadd.f32 %v1364_v42, %v1302_v37  ;;  %v1366_v44 = vpop.f32.mrb[22].mxu1 }
 0x2e7   : > { %v1367_v45 = vpop.f32.mrb[23].mxu1 }
 0x2e8   : > { %v1427_v46 = vpop.f32.mrb[24].mxu0 }
 0x2e9   : > { %v1434_v47 = vadd.f32 %v1427_v46, %v1369_v41  ;;  %v1429_v48 = vpop.f32.mrb[25].mxu0 }
 0x2ea   : > { %v1435_v49 = vadd.f32 %v1429_v48, %v1370_v43  ;;  %v1431_v50 = vpop.f32.mrb[26].mxu0  ;;  %v1771_v43 = vld [vmem:[%s2729_s7] sm:$0xff] }
 0x2eb   : > { %v1432_v51 = vpop.f32.mrb[27].mxu0 }
 0x2ec   : > { %v1481_v52 = vpop.f32.mrb[24].mxu1  ;;  %v1811_v51 = vpop.permute.xlu0 %1810 }
 0x2ed   : > { %v1488_v53 = vadd.f32 %v1481_v52, %v1434_v47  ;;  %v1483_v54 = vpop.f32.mrb[25].mxu1  ;;  %v1877_v47 = vld [vmem:[%s2734_s12] sm:$0xff] }
 0x2ee   : > { %v1489_v55 = vadd.f32 %v1483_v54, %v1435_v49  ;;  %v1485_v56 = vpop.f32.mrb[26].mxu1 }
 0x2ef   : > { %v1486_v57 = vpop.f32.mrb[27].mxu1 }
 0x2f0   : > { %v1546_v58 = vpop.f32.mrb[28].mxu0 }
 0x2f1   : > { %v1553_v59 = vadd.f32 %v1546_v58, %v1488_v53  ;;  %v1548_v60 = vpop.f32.mrb[29].mxu0 }
 0x2f2   : > { %v1554_v61 = vadd.f32 %v1548_v60, %v1489_v55  ;;  %v1550_v62 = vpop.f32.mrb[30].mxu0 }
 0x2f3   : > { %v1551_v63 = vpop.f32.mrb[31].mxu0  ;;  %v1874_v62 = vld [vmem:[%s2733_s11] sm:$0xf] }
 0x2f4   : > { %v1611_v1 = vpop.f32.mrb[28].mxu1  ;;  %v1780_v63 = vld [vmem:[%s2730_s8] sm:$0xff] }
 0x2f5   : > { %v1618_v2 = vadd.f32 %v1611_v1, %v1553_v59  ;;  %v1613_v3 = vpop.f32.mrb[29].mxu1 }
 0x2f6   : > { %v1619_v4 = vadd.f32 %v1613_v3, %v1554_v61  ;;  %v1615_v5 = vpop.f32.mrb[30].mxu1 }
 0x2f7   : > { %v1616_v6 = vpop.f32.mrb[31].mxu1 }
 0x2f8   : > { %v1671_v7 = vpop.f32.mrb[32].mxu0 }
 0x2f9   : > { %v1678_v8 = vadd.f32 %v1671_v7, %v1618_v2  ;;  %v1673_v9 = vpop.f32.mrb[33].mxu0  ;;  %v2047_v7 = vld [vmem:[%s2737_s15] sm:$0xff] }
 0x2fa   : > { %v1679_v10 = vadd.f32 %v1673_v9, %v1619_v4  ;;  %v1675_v11 = vpop.f32.mrb[34].mxu0 }
 0x2fb   : > { %v1676_v13 = vpop.f32.mrb[35].mxu0 }
 0x2fc   : > { %v1736_v14 = vpop.f32.mrb[32].mxu1 }
 0x2fd   : > { %v1743_v15 = vadd.f32 %v1736_v14, %v1678_v8  ;;  %v1738_v17 = vpop.f32.mrb[33].mxu1 }
 0x2fe   : > { %v1744_v16 = vadd.f32 %v1738_v17, %v1679_v10  ;;  %v1740_v19 = vpop.f32.mrb[34].mxu1 }
 0x2ff   : > { %v2653_v20 = vadd.f32 %v1749_v18, %v1743_v15  ;;  %v1741_v21 = vpop.f32.mrb[35].mxu1 }
 0x300   : > { %v2655_v22 = vadd.f32 %v1749_v18, %v1744_v16 }
 0x301   : > { %v1797_v23 = vpack.c.bf16 %v2653_v20, %v2653_v20 }
 0x302   : > { %v1798_v24 = vpack.c.bf16 %v2655_v22, %v2655_v22  ;;  %v1753_v26 = vadd.f32 %v2655_v22, %v2653_v20 }
 0x303   : > { %v1822_v27 = vsel %vm608_vm9, %v1797_v23, 0 }
 0x304   : > { %2177 = vmatprep.subr.msk.bf16.mxu0 %vm608_vm9, %v1798_v24  ;;  %1754 = vadd.xlane.f32.xlu1 %v1753_v26 }
 0x305   : > { %1828 = vmatpush1.bf16.msra.mxu0 %v1822_v27 }
 0x308   : > { %2178 = vmatmul.mubr.msk.bf16.vlgmr.msra.gmra.mrb[36].mxu0 %vm604_vm14, %v2209_v28 }
 0x309   : > { %1988 = vmatprep.mubr.bf16.mxu0 %v2232_v0 }
 0x391   : > { %v1755_v29 = vpop.xlane.xlu1 %1754 }
 0x392   : > { %v1757_v30 = vmul.f32 0.00390625, %v1755_v29 }
 0x394   : > { %v1759_v31 = vmul.f32 %v1758_v33, %v1757_v30 }
 0x396   : > { %v1761_v32 = vsel %vm1760_vm4, %v1759_v31, 0.0 }
 0x397   : > { %v1762_v34 = vrot.slane %v1761_v32, 4 }
 0x399   : > { %v1763_v35 = vadd.f32 %v1762_v34, %v1761_v32 }
 0x39b   : > { %v1764_v36 = vrot.slane %v1763_v35, 2 }
 0x39d   : > { %v1765_v37 = vadd.f32 %v1764_v36, %v1763_v35 }
 0x39f   : > { %v1766_v38 = vrot.slane %v1765_v37, 1 }
 0x3a1   : > { %v1767_v40 = vadd.f32 %v1766_v38, %v1765_v37  ;;  %v1941_v38 = vld [vmem:[%s2735_s13] sm:$0xf] }
 0x3a3   : > { %v1769_v41 = vadd.f32 %v1768_v39, %v1767_v40 }
 0x3a5   : > { %v1770_v42 = vmax.f32 %v1769_v41, 0.0 }
 0x3a7   : > { %v1775_v44 = vrot.slane %v1770_v42, %v2389_v12 }
 0x3a9   : > { %v1776_v45 = vmul.f32 %v1775_v44, %v1771_v43 }
 0x3ab   : > { %v1777_v46 = vsel %vm1760_vm4, %v1776_v45, 0.0 }
 0x3ac   : > { %1778 = vadd.xlane.f32.xlu0 %v1777_v46 }
 0x3c2   : > { %1880 = vperm.xlu0 %2207, %v1877_v47  }
 0x3db   : > { %v1861_v48 = vpop.f32.mrb[36].mxu0 }
 0x3dc   : > { %v1862_v49 = vadd.f32 %v1861_v48, %v1806_v25  ;;  %v1863_v50 = vpop.f32.mrb[37].mxu0 }
 0x3dd   : > { %v1864_v52 = vadd.f32 %v1863_v50, %v1806_v25  ;;  %v1865_v53 = vpop.f32.mrb[38].mxu0 }
 0x3de   : > { %v1866_v54 = vadd.f32 %v1865_v53, %v1811_v51  ;;  %v1867_v55 = vpop.f32.mrb[39].mxu0  ;;  %v1870_v57 = vmax.f32 %v1862_v49, 0.0  ;;  %v2223_v53 = vld [vmem:[%s2346_s27 + $0x8] sm:$0xff] }
 0x3df   : > { %v1868_v56 = vadd.f32 %v1867_v55, %v1811_v51  ;;  %v1871_v12 = vmax.f32 %v1864_v52, 0.0  ;;  %v2222_v51 = vld [vmem:[%s2346_s27] sm:$0xff] }
 0x3e0   : > { %v1872_v58 = vmax.f32 %v1866_v54, 0.0 }
 0x3e1   : > { %v1873_v59 = vmax.f32 %v1868_v56, 0.0 }
 0x3e2   : > { %v1875_v60 = vpack.c.bf16 %v1872_v58, %v1870_v57 }
 0x3e3   : > { %v1876_v61 = vpack.c.bf16 %v1873_v59, %v1871_v12 }
 0x3e5   : > { %1886 = vmatprep.subr.bf16.mxu1 %v1876_v61 }
 0x3e6   : > { %1887 = vmatpush1.bf16.msra.mxu1 %v1875_v60 }
 0x3e9   : > { %2179 = vmatmul.mubr.msk.bf16.vlgmr.msra.gmra.mrb[36].mxu1 %vm597_vm8, %v1874_v62 }
 0x3ea   : > { %2038 = vmatprep.mubr.bf16.mxu1 %v2232_v0 }
 0x439   : > { %v1779_v1 = vpop.xlane.xlu0 %1778 }
 0x43a   : > { %v1781_v2 = vadd.f32 %v1780_v63, %v1779_v1 }
 0x43c   : > { %v2175_v3 = vmul.f32 -1.442695, %v1781_v2 }
 0x43e   : > { %2210 = vpow2.f32 %v2175_v3 }
 0x441   : > { %v1881_v8 = vpop.permute.xlu0 %1880 }
 0x448   : > { %v2211_v4 = vpop.eup %2210 }
 0x449   : > { %v1785_v5 = vadd.f32 1.0, %v2211_v4 }
 0x44b   : > { %2212 = vrcp.f32 %v1785_v5 }
 0x455   : > { %v2213_v6 = vpop.eup %2212 }
 0x456   : > { %1790 = vperm.xlu1 %2208, %v2213_v6  }
 0x45a   : > { %2050 = vperm.xlu1 %2208, %v2047_v7  }
 0x4bc   : > { %v1920_v0 = vpop.f32.mrb[36].mxu1 }
 0x4bd   : > { %v1921_v9 = vadd.f32 %v1920_v0, %v1881_v8  ;;  %v1922_v10 = vpop.f32.mrb[37].mxu1 }
 0x4be   : > { %v1923_v11 = vadd.f32 %v1922_v10, %v1881_v8  ;;  %v1924_v13 = vpop.f32.mrb[38].mxu1 }
 0x4bf   : > { %v2180_v14 = vmul.f32 -1.442695, %v1921_v9  ;;  %v1925_v15 = vpop.f32.mrb[39].mxu1 }
 0x4c0   : > { %v2181_v17 = vmul.f32 -1.442695, %v1923_v11 }
 0x4c1   : > { %2214 = vpow2.f32 %v2180_v14 }
 0x4c2   : > { %2216 = vpow2.f32 %v2181_v17 }
 0x4cb   : > { %v2215_v18 = vpop.eup %2214 }
 0x4cc   : > { %v2217_v16 = vpop.eup %2216  ;;  %v1933_v19 = vadd.f32 1.0, %v2215_v18 }
 0x4cd   : > { %v1934_v21 = vadd.f32 1.0, %v2217_v16 }
 0x4ce   : > { %2218 = vrcp.f32 %v1933_v19 }
 0x4cf   : > { %2220 = vrcp.f32 %v1934_v21 }
 0x4d5   : > { %v1791_v23 = vpop.permute.xlu1 %1790 }
 0x4d6   : > { %v1793_v24 = vmul.f32 %v1791_v23, %v2653_v20  ;;  %v1794_v26 = vmul.f32 %v1791_v23, %v2655_v22 }
 0x4d8   : > { %v2219_v27 = vpop.eup %2218  ;;  %v1795_v28 = vmul.f32 %v1793_v24, %v2653_v20  ;;  %v1796_v25 = vmul.f32 %v1794_v26, %v2655_v22 }
 0x4d9   : > { %v2221_v33 = vpop.eup %2220  ;;  %v1939_v29 = vmul.f32 %v2219_v27, %v2653_v20  ;;  %v1944_v20 = vld [vmem:[%s2736_s14] sm:$0xf]  ;;  %v2051_v45 = vpop.permute.xlu1 %2050 }
 0x4da   : > { %v1942_v30 = vpack.c.bf16 %v1795_v28, %v1795_v28  ;;  %v1943_v31 = vpack.c.bf16 %v1796_v25, %v1796_v25  ;;  %v1940_v32 = vmul.f32 %v2221_v33, %v2655_v22 }
 0x4db   : > { %v1945_v34 = vpack.c.bf16 %v1939_v29, %v1939_v29 }
 0x4dc   : > { %2184 = vmatprep.subr.msk.bf16.mxu1 %vm608_vm9, %v1943_v31  ;;  %v2001_v35 = vsel %vm608_vm9, %v1942_v30, 0  ;;  %v1946_v36 = vpack.c.bf16 %v1940_v32, %v1940_v32 }
 0x4dd   : > { %2007 = vmatpush1.bf16.msra.mxu1 %v2001_v35  ;;  %v1951_v37 = vsel %vm608_vm9, %v1945_v34, 0 }
 0x4de   : > { %2182 = vmatprep.subr.msk.bf16.mxu0 %vm608_vm9, %v1946_v36 }
 0x4df   : > { %1957 = vmatpush1.bf16.msra.mxu0 %v1951_v37 }
 0x4e0   : > { %2185 = vmatmul.mubr.msk.bf16.vlgmr.msra.gmra.mrb[40].mxu1 %vm604_vm14, %v1941_v38 }
 0x4e2   : > { %2183 = vmatmul.mubr.msk.bf16.vlgmr.msra.gmra.mrb[40].mxu0 %vm604_vm14, %v1944_v20 }
 0x5b3   : > { %v2040_v22 = vpop.f32.mrb[40].mxu1 }
 0x5b4   : > { %v2042_v39 = vpop.f32.mrb[41].mxu1 }
 0x5b5   : > { %v1990_v40 = vpop.f32.mrb[40].mxu0  ;;  %v2044_v41 = vpop.f32.mrb[42].mxu1 }
 0x5b6   : > { %v2041_v42 = vadd.f32 %v2040_v22, %v1990_v40  ;;  %v1992_v43 = vpop.f32.mrb[41].mxu0  ;;  %v2045_v44 = vpop.f32.mrb[43].mxu1 }
 0x5b7   : > { %v2043_v46 = vadd.f32 %v2042_v39, %v1992_v43  ;;  %v1994_v47 = vpop.f32.mrb[42].mxu0 }
 0x5b8   : > { %v2053_v48 = vadd.f32 %v2051_v45, %v2041_v42  ;;  %v1995_v49 = vpop.f32.mrb[43].mxu0 }
 0x5b9   : > { %v2054_v50 = vadd.f32 %v2051_v45, %v2043_v46 }
 0x5ba   : > { %v2055_v52 = vadd.f32 %v2222_v51, %v2053_v48 }
 0x5bb   : > { %v2056_v54 = vadd.f32 %v2223_v53, %v2054_v50 }
 0x5bc   : > { %2057 = vst [vmem:[%s521_s29] sm:$0xff] %v2055_v52 }
 0x5bd   : > { %2058 = vst [vmem:[%s521_s29 + $0x8] sm:$0xff] %v2056_v54 }
 0x5be PF: > { %s26_s21 = sadd.s32 1, %s2230_s21  }
 0x5bf   : > { %p23_p4 = scmp.ge.s32.totalorder %s26_s21, 4  }
 0x5c1   :  { %25 = sbr.rel (!%p23_p4) target bundleno = 2 (0x2), region = 130 }

</bundles_post_ra>
